<compile_context>
chip_gen: v5e
topology: v5e:2x2
jax: 0.10.0
libtpu: 0.0.40
codegen_flags: <defaults>
</compile_context>

<pallas_src>
import functools

import jax
import jax.numpy as jnp
from jax import lax
from jax.experimental import pallas as pl
from jax.experimental.pallas import tpu as pltpu


def _dwconv3x3_kernel(x_ref, w_ref, o_ref, *, ch_chunk):
    # x_ref : (1, H+2, W+2, TC)  padded input block (VMEM), channels on lanes
    # w_ref : (3, 3, TC)         per-channel 3x3 filters (VMEM)
    # o_ref : (1, H, W, TC)      output block (VMEM)
    H = o_ref.shape[1]
    W = o_ref.shape[2]
    TC = o_ref.shape[3]
    n_chunks = TC // ch_chunk

    def chunk_body(c, carry):
        coff = pl.multiple_of(c * ch_chunk, ch_chunk)   # 128-aligned lane offset

        # Hoist the 9 per-channel filter rows for this chunk (1 vreg each).
        w_taps = [w_ref[kh, kw, pl.ds(coff, ch_chunk)]
                  for kh in range(3) for kw in range(3)]

        # Per-chunk accumulator stays in registers (~7 vregs for (7,7,128) f32).
        acc = jnp.zeros((1, H, W, ch_chunk), jnp.float32)
        t = 0
        for kh in range(3):            # static -> fully unrolled 9-tap MAC
            for kw in range(3):
                xw = x_ref[:, kh:kh + H, kw:kw + W, pl.ds(coff, ch_chunk)]
                acc = acc + xw.astype(jnp.float32) * w_taps[t].astype(jnp.float32)
                t += 1

        o_ref[:, :, :, pl.ds(coff, ch_chunk)] = acc.astype(o_ref.dtype)
        return carry

    lax.fori_loop(0, n_chunks, chunk_body, 0)


def depthwise_conv3x3_nhwc_padded(x_pad_nhwc, w_33c):
    """x_pad_nhwc: (N, H+2, W+2, C) zero-padded input; w_33c: (3, 3, C)."""
    N, Hp, Wp, C = x_pad_nhwc.shape
    H, W = Hp - 2, Wp - 2

    # Channel tiling: 2 parallel channel blocks when cleanly divisible (keeps
    # both v7x TensorCores busy; costs one extra cheap grid step on v5e/v6e),
    # otherwise a single full-C block.
    if C % 256 == 0:
        TC = C // 2
    else:
        TC = C
    n_cblk = C // TC
    ch_chunk = 128 if TC % 128 == 0 else TC

    kernel = functools.partial(_dwconv3x3_kernel, ch_chunk=ch_chunk)

    return pl.pallas_call(
        kernel,
        out_shape=jax.ShapeDtypeStruct((N, H, W, C), x_pad_nhwc.dtype),
        grid_spec=pltpu.PrefetchScalarGridSpec(
            num_scalar_prefetch=0,
            grid=(N, n_cblk),
            in_specs=[
                pl.BlockSpec((1, H + 2, W + 2, TC), lambda n, c: (n, 0, 0, c)),
                pl.BlockSpec((3, 3, TC), lambda n, c: (0, 0, c)),
            ],
            out_specs=pl.BlockSpec((1, H, W, TC), lambda n, c: (n, 0, 0, c)),
        ),
        compiler_params=pltpu.CompilerParams(
            dimension_semantics=("parallel", "parallel")),
    )(x_pad_nhwc, w_33c)


def depthwise_conv3x3(x_nchw, w_c33):
    """PyTorch-layout entry point.
    x_nchw: (N, C, H, W) float32; w_c33: (C, 3, 3) float32 (Conv2d(C, C, 3,
    padding=1, groups=C, bias=False).weight of shape (C,1,3,3) squeezed).
    Returns (N, C, H, W)."""
    # TODO(synk): NCHW<->NHWC layout plumbing; drop when the model is NHWC.
    x_nhwc = jnp.transpose(x_nchw, (0, 2, 3, 1))
    x_pad = jnp.pad(x_nhwc, ((0, 0), (1, 1), (1, 1), (0, 0)))   # fuses with the transpose under jit
    w_33c = jnp.transpose(w_c33, (1, 2, 0))
    out_nhwc = depthwise_conv3x3_nhwc_padded(x_pad, w_33c)
    return jnp.transpose(out_nhwc, (0, 3, 1, 2))


def _reference_dwconv(x_nchw, w_c33):
    # Reference via XLA's grouped conv (feature_group_count = C), full f32.
    C = x_nchw.shape[1]
    w = w_c33[:, None, :, :]  # (C, 1, 3, 3) == OIHW with I=1
    return lax.conv_general_dilated(
        x_nchw, w, window_strides=(1, 1), padding=((1, 1), (1, 1)),
        dimension_numbers=("NCHW", "OIHW", "NCHW"),
        feature_group_count=C, precision=lax.Precision.HIGHEST)


if __name__ == "__main__":
    # Shapes of the original module: Conv2d(2304, 2304, 3, padding=1,
    # groups=2304, bias=False) applied to (1, 2304, 7, 7).
    N, C, H, W = 1, 2304, 7, 7

    key = jax.random.PRNGKey(0)
    kx, kw = jax.random.split(key)
    x = jax.random.normal(kx, (N, C, H, W), dtype=jnp.float32)
    w = jax.random.normal(kw, (C, 3, 3), dtype=jnp.float32) * 0.1

    fwd = jax.jit(depthwise_conv3x3)
    out = jax.block_until_ready(fwd(x, w))

    ref = jax.block_until_ready(_reference_dwconv(x, w))
    assert out.shape == (N, C, H, W)
    assert jnp.allclose(out, ref, atol=1e-4, rtol=1e-4), "mismatch vs reference"

    print("KERNEL_OK")
</pallas_src>

<mosaic_0001>
module attributes {stable_mosaic.version = 11 : i64} {
  func.func @_dwconv3x3_kernel(%arg0: i32, %arg1: i32, %arg2: memref<1x9x9x1152xf32, #tpu.memory_space<vmem>>, %arg3: memref<3x3x1152xf32, #tpu.memory_space<vmem>>, %arg4: memref<1x7x7x1152xf32, #tpu.memory_space<vmem>>) attributes {dimension_semantics = [#tpu.dimension_semantics<parallel>, #tpu.dimension_semantics<parallel>], iteration_bounds = array<i64: 1, 2>, scalar_prefetch = 0 : i64, scratch_operands = 0 : i64, tpu.core_type = #tpu.core_type<tc>, window_params = [{transform_indices = @transform_0, window_bounds = array<i64: 1, 9, 9, 1152>}, {transform_indices = @transform_1, window_bounds = array<i64: 3, 3, 1152>}, {transform_indices = @transform_2, window_bounds = array<i64: 1, 7, 7, 1152>}]} {
    %c0_i32 = arith.constant 0 : i32
    %c9_i32 = arith.constant 9 : i32
    %0 = arith.addi %c0_i32, %c9_i32 : i32
    %c1_i32 = arith.constant 1 : i32
    scf.for %arg5 = %c0_i32 to %0 step %c1_i32  : i32 {
      %c128_i32 = arith.constant 128 : i32
      %1 = arith.muli %arg5, %c128_i32 : i32
      %2 = tpu.assume_multiple %1, 128 : i32
      %c0 = arith.constant 0 : index
      %c0_1 = arith.constant 0 : index
      %3 = arith.index_cast %2 : i32 to index
      %4 = vector.load %arg3[%c0, %c0_1, %3] : memref<3x3x1152xf32, #tpu.memory_space<vmem>>, vector<1x1x128xf32>
      %5 = vector.shape_cast %4 : vector<1x1x128xf32> to vector<128xf32>
      %c0_2 = arith.constant 0 : index
      %c1 = arith.constant 1 : index
      %6 = arith.index_cast %2 : i32 to index
      %7 = vector.load %arg3[%c0_2, %c1, %6] : memref<3x3x1152xf32, #tpu.memory_space<vmem>>, vector<1x1x128xf32>
      %8 = vector.shape_cast %7 : vector<1x1x128xf32> to vector<128xf32>
      %c0_3 = arith.constant 0 : index
      %c2 = arith.constant 2 : index
      %9 = arith.index_cast %2 : i32 to index
      %10 = vector.load %arg3[%c0_3, %c2, %9] : memref<3x3x1152xf32, #tpu.memory_space<vmem>>, vector<1x1x128xf32>
      %11 = vector.shape_cast %10 : vector<1x1x128xf32> to vector<128xf32>
      %c1_4 = arith.constant 1 : index
      %c0_5 = arith.constant 0 : index
      %12 = arith.index_cast %2 : i32 to index
      %13 = vector.load %arg3[%c1_4, %c0_5, %12] : memref<3x3x1152xf32, #tpu.memory_space<vmem>>, vector<1x1x128xf32>
      %14 = vector.shape_cast %13 : vector<1x1x128xf32> to vector<128xf32>
      %c1_6 = arith.constant 1 : index
      %c1_7 = arith.constant 1 : index
      %15 = arith.index_cast %2 : i32 to index
      %16 = vector.load %arg3[%c1_6, %c1_7, %15] : memref<3x3x1152xf32, #tpu.memory_space<vmem>>, vector<1x1x128xf32>
      %17 = vector.shape_cast %16 : vector<1x1x128xf32> to vector<128xf32>
      %c1_8 = arith.constant 1 : index
      %c2_9 = arith.constant 2 : index
      %18 = arith.index_cast %2 : i32 to index
      %19 = vector.load %arg3[%c1_8, %c2_9, %18] : memref<3x3x1152xf32, #tpu.memory_space<vmem>>, vector<1x1x128xf32>
      %20 = vector.shape_cast %19 : vector<1x1x128xf32> to vector<128xf32>
      %c2_10 = arith.constant 2 : index
      %c0_11 = arith.constant 0 : index
      %21 = arith.index_cast %2 : i32 to index
      %22 = vector.load %arg3[%c2_10, %c0_11, %21] : memref<3x3x1152xf32, #tpu.memory_space<vmem>>, vector<1x1x128xf32>
      %23 = vector.shape_cast %22 : vector<1x1x128xf32> to vector<128xf32>
      %c2_12 = arith.constant 2 : index
      %c1_13 = arith.constant 1 : index
      %24 = arith.index_cast %2 : i32 to index
      %25 = vector.load %arg3[%c2_12, %c1_13, %24] : memref<3x3x1152xf32, #tpu.memory_space<vmem>>, vector<1x1x128xf32>
      %26 = vector.shape_cast %25 : vector<1x1x128xf32> to vector<128xf32>
      %c2_14 = arith.constant 2 : index
      %c2_15 = arith.constant 2 : index
      %27 = arith.index_cast %2 : i32 to index
      %28 = vector.load %arg3[%c2_14, %c2_15, %27] : memref<3x3x1152xf32, #tpu.memory_space<vmem>>, vector<1x1x128xf32>
      %29 = vector.shape_cast %28 : vector<1x1x128xf32> to vector<128xf32>
      %cst = arith.constant 0.000000e+00 : f32
      %30 = vector.broadcast %cst : f32 to vector<1x7x7x128xf32>
      %c0_16 = arith.constant 0 : index
      %c0_17 = arith.constant 0 : index
      %c0_18 = arith.constant 0 : index
      %31 = arith.index_cast %2 : i32 to index
      %32 = vector.load %arg2[%c0_16, %c0_17, %c0_18, %31] : memref<1x9x9x1152xf32, #tpu.memory_space<vmem>>, vector<1x7x7x128xf32>
      %33 = vector.shape_cast %5 : vector<128xf32> to vector<1x1x1x128xf32>
      %34 = vector.broadcast %33 : vector<1x1x1x128xf32> to vector<1x7x7x128xf32>
      %35 = arith.mulf %32, %34 : vector<1x7x7x128xf32>
      %36 = arith.addf %30, %35 : vector<1x7x7x128xf32>
      %c0_19 = arith.constant 0 : index
      %c0_20 = arith.constant 0 : index
      %c1_21 = arith.constant 1 : index
      %37 = arith.index_cast %2 : i32 to index
      %38 = vector.load %arg2[%c0_19, %c0_20, %c1_21, %37] : memref<1x9x9x1152xf32, #tpu.memory_space<vmem>>, vector<1x7x7x128xf32>
      %39 = vector.shape_cast %8 : vector<128xf32> to vector<1x1x1x128xf32>
      %40 = vector.broadcast %39 : vector<1x1x1x128xf32> to vector<1x7x7x128xf32>
      %41 = arith.mulf %38, %40 : vector<1x7x7x128xf32>
      %42 = arith.addf %36, %41 : vector<1x7x7x128xf32>
      %c0_22 = arith.constant 0 : index
      %c0_23 = arith.constant 0 : index
      %c2_24 = arith.constant 2 : index
      %43 = arith.index_cast %2 : i32 to index
      %44 = vector.load %arg2[%c0_22, %c0_23, %c2_24, %43] : memref<1x9x9x1152xf32, #tpu.memory_space<vmem>>, vector<1x7x7x128xf32>
      %45 = vector.shape_cast %11 : vector<128xf32> to vector<1x1x1x128xf32>
      %46 = vector.broadcast %45 : vector<1x1x1x128xf32> to vector<1x7x7x128xf32>
      %47 = arith.mulf %44, %46 : vector<1x7x7x128xf32>
      %48 = arith.addf %42, %47 : vector<1x7x7x128xf32>
      %c0_25 = arith.constant 0 : index
      %c1_26 = arith.constant 1 : index
      %c0_27 = arith.constant 0 : index
      %49 = arith.index_cast %2 : i32 to index
      %50 = vector.load %arg2[%c0_25, %c1_26, %c0_27, %49] : memref<1x9x9x1152xf32, #tpu.memory_space<vmem>>, vector<1x7x7x128xf32>
      %51 = vector.shape_cast %14 : vector<128xf32> to vector<1x1x1x128xf32>
      %52 = vector.broadcast %51 : vector<1x1x1x128xf32> to vector<1x7x7x128xf32>
      %53 = arith.mulf %50, %52 : vector<1x7x7x128xf32>
      %54 = arith.addf %48, %53 : vector<1x7x7x128xf32>
      %c0_28 = arith.constant 0 : index
      %c1_29 = arith.constant 1 : index
      %c1_30 = arith.constant 1 : index
      %55 = arith.index_cast %2 : i32 to index
      %56 = vector.load %arg2[%c0_28, %c1_29, %c1_30, %55] : memref<1x9x9x1152xf32, #tpu.memory_space<vmem>>, vector<1x7x7x128xf32>
      %57 = vector.shape_cast %17 : vector<128xf32> to vector<1x1x1x128xf32>
      %58 = vector.broadcast %57 : vector<1x1x1x128xf32> to vector<1x7x7x128xf32>
      %59 = arith.mulf %56, %58 : vector<1x7x7x128xf32>
      %60 = arith.addf %54, %59 : vector<1x7x7x128xf32>
      %c0_31 = arith.constant 0 : index
      %c1_32 = arith.constant 1 : index
      %c2_33 = arith.constant 2 : index
      %61 = arith.index_cast %2 : i32 to index
      %62 = vector.load %arg2[%c0_31, %c1_32, %c2_33, %61] : memref<1x9x9x1152xf32, #tpu.memory_space<vmem>>, vector<1x7x7x128xf32>
      %63 = vector.shape_cast %20 : vector<128xf32> to vector<1x1x1x128xf32>
      %64 = vector.broadcast %63 : vector<1x1x1x128xf32> to vector<1x7x7x128xf32>
      %65 = arith.mulf %62, %64 : vector<1x7x7x128xf32>
      %66 = arith.addf %60, %65 : vector<1x7x7x128xf32>
      %c0_34 = arith.constant 0 : index
      %c2_35 = arith.constant 2 : index
      %c0_36 = arith.constant 0 : index
      %67 = arith.index_cast %2 : i32 to index
      %68 = vector.load %arg2[%c0_34, %c2_35, %c0_36, %67] : memref<1x9x9x1152xf32, #tpu.memory_space<vmem>>, vector<1x7x7x128xf32>
      %69 = vector.shape_cast %23 : vector<128xf32> to vector<1x1x1x128xf32>
      %70 = vector.broadcast %69 : vector<1x1x1x128xf32> to vector<1x7x7x128xf32>
      %71 = arith.mulf %68, %70 : vector<1x7x7x128xf32>
      %72 = arith.addf %66, %71 : vector<1x7x7x128xf32>
      %c0_37 = arith.constant 0 : index
      %c2_38 = arith.constant 2 : index
      %c1_39 = arith.constant 1 : index
      %73 = arith.index_cast %2 : i32 to index
      %74 = vector.load %arg2[%c0_37, %c2_38, %c1_39, %73] : memref<1x9x9x1152xf32, #tpu.memory_space<vmem>>, vector<1x7x7x128xf32>
      %75 = vector.shape_cast %26 : vector<128xf32> to vector<1x1x1x128xf32>
      %76 = vector.broadcast %75 : vector<1x1x1x128xf32> to vector<1x7x7x128xf32>
      %77 = arith.mulf %74, %76 : vector<1x7x7x128xf32>
      %78 = arith.addf %72, %77 : vector<1x7x7x128xf32>
      %c0_40 = arith.constant 0 : index
      %c2_41 = arith.constant 2 : index
      %c2_42 = arith.constant 2 : index
      %79 = arith.index_cast %2 : i32 to index
      %80 = vector.load %arg2[%c0_40, %c2_41, %c2_42, %79] : memref<1x9x9x1152xf32, #tpu.memory_space<vmem>>, vector<1x7x7x128xf32>
      %81 = vector.shape_cast %29 : vector<128xf32> to vector<1x1x1x128xf32>
      %82 = vector.broadcast %81 : vector<1x1x1x128xf32> to vector<1x7x7x128xf32>
      %83 = arith.mulf %80, %82 : vector<1x7x7x128xf32>
      %84 = arith.addf %78, %83 : vector<1x7x7x128xf32>
      %c0_43 = arith.constant 0 : index
      %c0_44 = arith.constant 0 : index
      %c0_45 = arith.constant 0 : index
      %85 = arith.index_cast %2 : i32 to index
      %86 = vector.load %arg4[%c0_43, %c0_44, %c0_45, %85] : memref<1x7x7x1152xf32, #tpu.memory_space<vmem>>, vector<1x7x7x128xf32>
      tpu.vector_store %arg4[%c0_43, %c0_44, %c0_45, %85], %84 {strides = array<i32>} : memref<1x7x7x1152xf32, #tpu.memory_space<vmem>>, vector<1x7x7x128xf32>,
    }
    %c9_i32_0 = arith.constant 9 : i32
    return
  }
  func.func @transform_0(%arg0: i32, %arg1: i32) -> (i32, i32, i32, i32) {
    %c0_i32 = arith.constant 0 : i32
    %c0_i32_0 = arith.constant 0 : i32
    %c0_i32_1 = arith.constant 0 : i32
    return %arg0, %c0_i32, %c0_i32_0, %arg1 : i32, i32, i32, i32
  }
  func.func @transform_1(%arg0: i32, %arg1: i32) -> (i32, i32, i32) {
    %c0_i32 = arith.constant 0 : i32
    %c0_i32_0 = arith.constant 0 : i32
    %c0_i32_1 = arith.constant 0 : i32
    return %c0_i32, %c0_i32_0, %arg1 : i32, i32, i32
  }
  func.func @transform_2(%arg0: i32, %arg1: i32) -> (i32, i32, i32, i32) {
    %c0_i32 = arith.constant 0 : i32
    %c0_i32_0 = arith.constant 0 : i32
    %c0_i32_1 = arith.constant 0 : i32
    return %arg0, %c0_i32, %c0_i32_0, %arg1 : i32, i32, i32, i32
  }
}

</mosaic_0001>

<bundles_post_ra>
// kernel: depthwise_conv3x3.1
= control target key start
LH: loop header
LB: loop body
LE: loop exit
PB: predicated region body
PF: predicated region fallthrough
CT: control target
= control target key end

     0   :  { %s1534_s9 = smov 0   ;;  %s1536_s10 = smov 0   ;;  %s2330_s0 = inlined_call_operand.vmem [shape: f32[1,9,9,2304], index: 0, kind: input, shape index: {}]   ;;  %s2331_s1 = inlined_call_operand.vmem [shape: f32[3,3,2304], index: 1, kind: input, shape index: {}]   ;;  %s2332_s2 = inlined_call_operand.vmem [shape: f32[1,7,7,2304], index: 2, kind: output, shape index: {}]  }
   0x1   :  { %s1538_s11 = smov 0   ;;  %s1540_s12 = smov 0  }
   0x2   :  { %s1542_s13 = smov 0  }
   0x3 LB: > { %s21_s14 = sadd.s32 1, %s1509_s12  ;;  %s1320_s15 = sadd.s32 4294967295, %s1513_s13   ;;  %s1513_s13 = sphi %s1542_s13, %s12_s13   ;;  %s1509_s12 = sphi %s1540_s12, %s2338_s12   ;;  %s1505_s11 = sphi %s1538_s11, %s2337_s11   ;;  %s1501_s10 = sphi %s1536_s10, %s2336_s10   ;;  %s1497_s9 = sphi %s1534_s9, %s2335_s9  }
   0x4   : > { %p22_p0 = scmp.ge.s32.totalorder %s21_s14, 2  ;;  %p40_p1 = scmp.ne.s32.totalorder %s1501_s10, %s1497_s9 }
   0x5   : > { %p41_p2 = scmp.eq.s32.totalorder %s1513_s13, 0  ;;  %p98_p4 = scmp.eq.s32.totalorder %s1320_s15, 1 }
   0x6   : > { %s2340_s14 = smov (%p22_p0, %s21_s14), 0  ;;  %s33_s18 = sadd.s32 1, %s1501_s10 }
   0x7   : > { %p1566_p3 = por %p41_p2, %p40_p1  ;;  %s29_s17 = ssub.s32 %s1509_s12, %s2340_s14 }
   0x8   : > { %p31_p5 = scmp.eq.s32.totalorder %s29_s17, 0  ;;  %p1573_p6 = por %p98_p4, %p40_p1 }
   0x9   : > { %p1323_p7 = scmp.ge.s32.totalorder %s1513_s13, 2 }
   0xa   : > { %s1578_s20 = scalar_select %p31_p5, %s1501_s10, %s33_s18  }
   0xb   : > { %120 = sbr.rel (%p1323_p7) target bundleno = 203 (0xcb), region = 16 }
  0x10   : > { %123 = sbr.rel (!%p1566_p3) target bundleno = 183 (0xb7), region = 20  ;;  %s125_s21 = sand.u32 (%p1566_p3), 1, %s1501_s10  }
  0x11   : > { %s1406_s22 = smul.u32 (%p1566_p3), 72, %s1509_s12 }
  0x12   : > { %s1409_s23 = smul.u32 (%p1566_p3), 1296, %s125_s21 }
  0x13   : > { %s1588_s26 = scalar_lea.vmem (%p1566_p3), %s2330_s0, %s1406_s22 }
  0x14   : > { %v145_v0 = vld [vmem:[%s1588_s26] sm:$0xff] (%p1566_p3)  ;;  %v147_v1 = vld [vmem:[%s1588_s26 + $0x8] sm:$0xff] (%p1566_p3)  ;;  %v149_v2 = vld [vmem:[%s1588_s26 + $0x10] sm:$0xff] (%p1566_p3)  ;;  %s1593_s27 = scalar_lea.vmem (%p1566_p3), [#allocation2], %s1409_s23 }
  0x15   : > { %146 = vst [vmem:[%s1593_s27] sm:$0xff] %v145_v0  ;;  %v151_v3 = vld [vmem:[%s1588_s26 + $0x18] sm:$0xff]  ;;  %v153_v4 = vld [vmem:[%s1588_s26 + $0x20] sm:$0xff]  ;;  %v155_v5 = vld [vmem:[%s1588_s26 + $0x28] sm:$0xff] }
  0x16   : > { %148 = vst [vmem:[%s1593_s27 + $0x8] sm:$0xff] %v147_v1  ;;  %v157_v6 = vld [vmem:[%s1588_s26 + $0x30] sm:$0xff]  ;;  %v159_v7 = vld [vmem:[%s1588_s26 + $0x38] sm:$0xff]  ;;  %v161_v8 = vld [vmem:[%s1588_s26 + $0x40] sm:$0xff] }
  0x17   : > { %150 = vst [vmem:[%s1593_s27 + $0x10] sm:$0xff] %v149_v2  ;;  %v163_v9 = vld [vmem:[%s1588_s26 + $0x90] sm:$0xff]  ;;  %v165_v10 = vld [vmem:[%s1588_s26 + $0x98] sm:$0xff]  ;;  %v167_v11 = vld [vmem:[%s1588_s26 + $0xa0] sm:$0xff] }
  0x18   : > { %152 = vst [vmem:[%s1593_s27 + $0x18] sm:$0xff] %v151_v3  ;;  %v169_v12 = vld [vmem:[%s1588_s26 + $0xa8] sm:$0xff]  ;;  %v171_v13 = vld [vmem:[%s1588_s26 + $0xb0] sm:$0xff]  ;;  %v173_v14 = vld [vmem:[%s1588_s26 + $0xb8] sm:$0xff] }
  0x19   : > { %154 = vst [vmem:[%s1593_s27 + $0x20] sm:$0xff] %v153_v4  ;;  %v175_v15 = vld [vmem:[%s1588_s26 + $0xc0] sm:$0xff]  ;;  %v177_v16 = vld [vmem:[%s1588_s26 + $0xc8] sm:$0xff]  ;;  %v179_v17 = vld [vmem:[%s1588_s26 + $0xd0] sm:$0xff] }
  0x1a   : > { %156 = vst [vmem:[%s1593_s27 + $0x28] sm:$0xff] %v155_v5  ;;  %v181_v18 = vld [vmem:[%s1588_s26 + $0x120] sm:$0xff]  ;;  %v183_v19 = vld [vmem:[%s1588_s26 + $0x128] sm:$0xff]  ;;  %v185_v20 = vld [vmem:[%s1588_s26 + $0x130] sm:$0xff] }
  0x1b   : > { %158 = vst [vmem:[%s1593_s27 + $0x30] sm:$0xff] %v157_v6  ;;  %v187_v21 = vld [vmem:[%s1588_s26 + $0x138] sm:$0xff]  ;;  %v189_v22 = vld [vmem:[%s1588_s26 + $0x140] sm:$0xff]  ;;  %v191_v23 = vld [vmem:[%s1588_s26 + $0x148] sm:$0xff] }
  0x1c   : > { %160 = vst [vmem:[%s1593_s27 + $0x38] sm:$0xff] %v159_v7  ;;  %v193_v24 = vld [vmem:[%s1588_s26 + $0x150] sm:$0xff]  ;;  %v195_v25 = vld [vmem:[%s1588_s26 + $0x158] sm:$0xff]  ;;  %v197_v26 = vld [vmem:[%s1588_s26 + $0x160] sm:$0xff] }
  0x1d   : > { %162 = vst [vmem:[%s1593_s27 + $0x40] sm:$0xff] %v161_v8  ;;  %v199_v27 = vld [vmem:[%s1588_s26 + $0x1b0] sm:$0xff]  ;;  %v201_v28 = vld [vmem:[%s1588_s26 + $0x1b8] sm:$0xff]  ;;  %v203_v29 = vld [vmem:[%s1588_s26 + $0x1c0] sm:$0xff] }
  0x1e   : > { %164 = vst [vmem:[%s1593_s27 + $0x48] sm:$0xff] %v163_v9  ;;  %v205_v30 = vld [vmem:[%s1588_s26 + $0x1c8] sm:$0xff]  ;;  %v207_v31 = vld [vmem:[%s1588_s26 + $0x1d0] sm:$0xff]  ;;  %v209_v32 = vld [vmem:[%s1588_s26 + $0x1d8] sm:$0xff] }
  0x1f   : > { %166 = vst [vmem:[%s1593_s27 + $0x50] sm:$0xff] %v165_v10  ;;  %v211_v33 = vld [vmem:[%s1588_s26 + $0x1e0] sm:$0xff]  ;;  %v213_v34 = vld [vmem:[%s1588_s26 + $0x1e8] sm:$0xff]  ;;  %v215_v35 = vld [vmem:[%s1588_s26 + $0x1f0] sm:$0xff] }
  0x20   : > { %168 = vst [vmem:[%s1593_s27 + $0x58] sm:$0xff] %v167_v11  ;;  %v217_v36 = vld [vmem:[%s1588_s26 + $0x240] sm:$0xff]  ;;  %v219_v37 = vld [vmem:[%s1588_s26 + $0x248] sm:$0xff]  ;;  %v221_v38 = vld [vmem:[%s1588_s26 + $0x250] sm:$0xff] }
  0x21   : > { %170 = vst [vmem:[%s1593_s27 + $0x60] sm:$0xff] %v169_v12  ;;  %v223_v39 = vld [vmem:[%s1588_s26 + $0x258] sm:$0xff]  ;;  %v225_v40 = vld [vmem:[%s1588_s26 + $0x260] sm:$0xff]  ;;  %v227_v41 = vld [vmem:[%s1588_s26 + $0x268] sm:$0xff] }
  0x22   : > { %172 = vst [vmem:[%s1593_s27 + $0x68] sm:$0xff] %v171_v13  ;;  %v229_v42 = vld [vmem:[%s1588_s26 + $0x270] sm:$0xff]  ;;  %v231_v43 = vld [vmem:[%s1588_s26 + $0x278] sm:$0xff]  ;;  %v233_v44 = vld [vmem:[%s1588_s26 + $0x280] sm:$0xff] }
  0x23   : > { %174 = vst [vmem:[%s1593_s27 + $0x70] sm:$0xff] %v173_v14  ;;  %v235_v45 = vld [vmem:[%s1588_s26 + $0x2d0] sm:$0xff]  ;;  %v237_v46 = vld [vmem:[%s1588_s26 + $0x2d8] sm:$0xff]  ;;  %v239_v47 = vld [vmem:[%s1588_s26 + $0x2e0] sm:$0xff] }
  0x24   : > { %176 = vst [vmem:[%s1593_s27 + $0x78] sm:$0xff] %v175_v15  ;;  %v241_v48 = vld [vmem:[%s1588_s26 + $0x2e8] sm:$0xff]  ;;  %v243_v49 = vld [vmem:[%s1588_s26 + $0x2f0] sm:$0xff]  ;;  %v245_v50 = vld [vmem:[%s1588_s26 + $0x2f8] sm:$0xff] }
  0x25   : > { %178 = vst [vmem:[%s1593_s27 + $0x80] sm:$0xff] %v177_v16  ;;  %v247_v51 = vld [vmem:[%s1588_s26 + $0x300] sm:$0xff]  ;;  %v249_v52 = vld [vmem:[%s1588_s26 + $0x308] sm:$0xff]  ;;  %v251_v53 = vld [vmem:[%s1588_s26 + $0x310] sm:$0xff] }
  0x26   : > { %180 = vst [vmem:[%s1593_s27 + $0x88] sm:$0xff] %v179_v17  ;;  %v253_v54 = vld [vmem:[%s1588_s26 + $0x360] sm:$0xff]  ;;  %v255_v55 = vld [vmem:[%s1588_s26 + $0x368] sm:$0xff]  ;;  %v257_v56 = vld [vmem:[%s1588_s26 + $0x370] sm:$0xff] }
  0x27   : > { %182 = vst [vmem:[%s1593_s27 + $0x90] sm:$0xff] %v181_v18  ;;  %v259_v57 = vld [vmem:[%s1588_s26 + $0x378] sm:$0xff]  ;;  %v261_v58 = vld [vmem:[%s1588_s26 + $0x380] sm:$0xff]  ;;  %v263_v59 = vld [vmem:[%s1588_s26 + $0x388] sm:$0xff] }
  0x28   : > { %184 = vst [vmem:[%s1593_s27 + $0x98] sm:$0xff] %v183_v19  ;;  %v265_v60 = vld [vmem:[%s1588_s26 + $0x390] sm:$0xff]  ;;  %v267_v61 = vld [vmem:[%s1588_s26 + $0x398] sm:$0xff]  ;;  %v269_v62 = vld [vmem:[%s1588_s26 + $0x3a0] sm:$0xff] }
  0x29   : > { %186 = vst [vmem:[%s1593_s27 + $0xa0] sm:$0xff] %v185_v20  ;;  %v271_v63 = vld [vmem:[%s1588_s26 + $0x3f0] sm:$0xff]  ;;  %v273_v0 = vld [vmem:[%s1588_s26 + $0x3f8] sm:$0xff]  ;;  %v275_v1 = vld [vmem:[%s1588_s26 + $0x400] sm:$0xff] }
  0x2a   : > { %188 = vst [vmem:[%s1593_s27 + $0xa8] sm:$0xff] %v187_v21  ;;  %v277_v2 = vld [vmem:[%s1588_s26 + $0x408] sm:$0xff]  ;;  %v279_v3 = vld [vmem:[%s1588_s26 + $0x410] sm:$0xff]  ;;  %v281_v4 = vld [vmem:[%s1588_s26 + $0x418] sm:$0xff] }
  0x2b   : > { %190 = vst [vmem:[%s1593_s27 + $0xb0] sm:$0xff] %v189_v22  ;;  %v283_v5 = vld [vmem:[%s1588_s26 + $0x420] sm:$0xff]  ;;  %v285_v6 = vld [vmem:[%s1588_s26 + $0x428] sm:$0xff]  ;;  %v287_v7 = vld [vmem:[%s1588_s26 + $0x430] sm:$0xff] }
  0x2c   : > { %192 = vst [vmem:[%s1593_s27 + $0xb8] sm:$0xff] %v191_v23  ;;  %v289_v8 = vld [vmem:[%s1588_s26 + $0x480] sm:$0xff]  ;;  %v291_v9 = vld [vmem:[%s1588_s26 + $0x488] sm:$0xff]  ;;  %v293_v10 = vld [vmem:[%s1588_s26 + $0x490] sm:$0xff] }
  0x2d   : > { %194 = vst [vmem:[%s1593_s27 + $0xc0] sm:$0xff] %v193_v24  ;;  %v295_v11 = vld [vmem:[%s1588_s26 + $0x498] sm:$0xff]  ;;  %v297_v12 = vld [vmem:[%s1588_s26 + $0x4a0] sm:$0xff]  ;;  %v299_v13 = vld [vmem:[%s1588_s26 + $0x4a8] sm:$0xff] }
  0x2e   : > { %196 = vst [vmem:[%s1593_s27 + $0xc8] sm:$0xff] %v195_v25  ;;  %v301_v14 = vld [vmem:[%s1588_s26 + $0x4b0] sm:$0xff]  ;;  %v303_v15 = vld [vmem:[%s1588_s26 + $0x4b8] sm:$0xff]  ;;  %v305_v16 = vld [vmem:[%s1588_s26 + $0x4c0] sm:$0xff] }
  0x2f   : > { %198 = vst [vmem:[%s1593_s27 + $0xd0] sm:$0xff] %v197_v26  ;;  %v307_v17 = vld [vmem:[%s1588_s26 + $0x510] sm:$0xff]  ;;  %v309_v18 = vld [vmem:[%s1588_s26 + $0x518] sm:$0xff]  ;;  %v311_v19 = vld [vmem:[%s1588_s26 + $0x520] sm:$0xff] }
  0x30   : > { %200 = vst [vmem:[%s1593_s27 + $0xd8] sm:$0xff] %v199_v27  ;;  %v313_v20 = vld [vmem:[%s1588_s26 + $0x528] sm:$0xff]  ;;  %v315_v21 = vld [vmem:[%s1588_s26 + $0x530] sm:$0xff]  ;;  %v317_v22 = vld [vmem:[%s1588_s26 + $0x538] sm:$0xff] }
  0x31   : > { %202 = vst [vmem:[%s1593_s27 + $0xe0] sm:$0xff] %v201_v28  ;;  %v319_v23 = vld [vmem:[%s1588_s26 + $0x540] sm:$0xff]  ;;  %v321_v24 = vld [vmem:[%s1588_s26 + $0x548] sm:$0xff]  ;;  %v323_v25 = vld [vmem:[%s1588_s26 + $0x550] sm:$0xff] }
  0x32   : > { %204 = vst [vmem:[%s1593_s27 + $0xe8] sm:$0xff] %v203_v29  ;;  %v325_v26 = vld [vmem:[%s1588_s26 + $0x5a0] sm:$0xff]  ;;  %v327_v27 = vld [vmem:[%s1588_s26 + $0x5a8] sm:$0xff]  ;;  %v329_v28 = vld [vmem:[%s1588_s26 + $0x5b0] sm:$0xff] }
  0x33   : > { %206 = vst [vmem:[%s1593_s27 + $0xf0] sm:$0xff] %v205_v30  ;;  %v331_v29 = vld [vmem:[%s1588_s26 + $0x5b8] sm:$0xff]  ;;  %v333_v30 = vld [vmem:[%s1588_s26 + $0x5c0] sm:$0xff] }
  0x34   : > { %208 = vst [vmem:[%s1593_s27 + $0xf8] sm:$0xff] %v207_v31  ;;  %v335_v31 = vld [vmem:[%s1588_s26 + $0x5c8] sm:$0xff] }
  0x35   : > { %210 = vst [vmem:[%s1593_s27 + $0x100] sm:$0xff] %v209_v32  ;;  %v337_v32 = vld [vmem:[%s1588_s26 + $0x5d0] sm:$0xff] }
  0x36   : > { %212 = vst [vmem:[%s1593_s27 + $0x108] sm:$0xff] %v211_v33  ;;  %v339_v33 = vld [vmem:[%s1588_s26 + $0x5d8] sm:$0xff] }
  0x37   : > { %214 = vst [vmem:[%s1593_s27 + $0x110] sm:$0xff] %v213_v34  ;;  %v341_v34 = vld [vmem:[%s1588_s26 + $0x5e0] sm:$0xff] }
  0x38   : > { %216 = vst [vmem:[%s1593_s27 + $0x118] sm:$0xff] %v215_v35  ;;  %v343_v35 = vld [vmem:[%s1588_s26 + $0x630] sm:$0xff] }
  0x39   : > { %218 = vst [vmem:[%s1593_s27 + $0x120] sm:$0xff] %v217_v36  ;;  %v345_v36 = vld [vmem:[%s1588_s26 + $0x638] sm:$0xff] }
  0x3a   : > { %220 = vst [vmem:[%s1593_s27 + $0x128] sm:$0xff] %v219_v37  ;;  %v347_v37 = vld [vmem:[%s1588_s26 + $0x640] sm:$0xff] }
  0x3b   : > { %222 = vst [vmem:[%s1593_s27 + $0x130] sm:$0xff] %v221_v38  ;;  %v349_v38 = vld [vmem:[%s1588_s26 + $0x648] sm:$0xff] }
  0x3c   : > { %224 = vst [vmem:[%s1593_s27 + $0x138] sm:$0xff] %v223_v39  ;;  %v351_v39 = vld [vmem:[%s1588_s26 + $0x650] sm:$0xff] }
  0x3d   : > { %226 = vst [vmem:[%s1593_s27 + $0x140] sm:$0xff] %v225_v40  ;;  %v353_v40 = vld [vmem:[%s1588_s26 + $0x658] sm:$0xff] }
  0x3e   : > { %228 = vst [vmem:[%s1593_s27 + $0x148] sm:$0xff] %v227_v41  ;;  %v355_v41 = vld [vmem:[%s1588_s26 + $0x660] sm:$0xff] }
  0x3f   : > { %230 = vst [vmem:[%s1593_s27 + $0x150] sm:$0xff] %v229_v42  ;;  %v357_v42 = vld [vmem:[%s1588_s26 + $0x668] sm:$0xff] }
  0x40   : > { %232 = vst [vmem:[%s1593_s27 + $0x158] sm:$0xff] %v231_v43  ;;  %v359_v43 = vld [vmem:[%s1588_s26 + $0x670] sm:$0xff] }
  0x41   : > { %234 = vst [vmem:[%s1593_s27 + $0x160] sm:$0xff] %v233_v44  ;;  %v361_v44 = vld [vmem:[%s1588_s26 + $0x6c0] sm:$0xff] }
  0x42   : > { %236 = vst [vmem:[%s1593_s27 + $0x168] sm:$0xff] %v235_v45  ;;  %v363_v45 = vld [vmem:[%s1588_s26 + $0x6c8] sm:$0xff] }
  0x43   : > { %238 = vst [vmem:[%s1593_s27 + $0x170] sm:$0xff] %v237_v46  ;;  %v365_v46 = vld [vmem:[%s1588_s26 + $0x6d0] sm:$0xff] }
  0x44   : > { %240 = vst [vmem:[%s1593_s27 + $0x178] sm:$0xff] %v239_v47  ;;  %v367_v47 = vld [vmem:[%s1588_s26 + $0x6d8] sm:$0xff] }
  0x45   : > { %242 = vst [vmem:[%s1593_s27 + $0x180] sm:$0xff] %v241_v48  ;;  %v369_v48 = vld [vmem:[%s1588_s26 + $0x6e0] sm:$0xff] }
  0x46   : > { %244 = vst [vmem:[%s1593_s27 + $0x188] sm:$0xff] %v243_v49  ;;  %v371_v49 = vld [vmem:[%s1588_s26 + $0x6e8] sm:$0xff] }
  0x47   : > { %246 = vst [vmem:[%s1593_s27 + $0x190] sm:$0xff] %v245_v50  ;;  %v373_v50 = vld [vmem:[%s1588_s26 + $0x6f0] sm:$0xff] }
  0x48   : > { %248 = vst [vmem:[%s1593_s27 + $0x198] sm:$0xff] %v247_v51  ;;  %v375_v51 = vld [vmem:[%s1588_s26 + $0x6f8] sm:$0xff] }
  0x49   : > { %250 = vst [vmem:[%s1593_s27 + $0x1a0] sm:$0xff] %v249_v52  ;;  %v377_v52 = vld [vmem:[%s1588_s26 + $0x700] sm:$0xff] }
  0x4a   : > { %252 = vst [vmem:[%s1593_s27 + $0x1a8] sm:$0xff] %v251_v53  ;;  %v379_v53 = vld [vmem:[%s1588_s26 + $0x750] sm:$0xff] }
  0x4b   : > { %254 = vst [vmem:[%s1593_s27 + $0x1b0] sm:$0xff] %v253_v54  ;;  %v381_v54 = vld [vmem:[%s1588_s26 + $0x758] sm:$0xff] }
  0x4c   : > { %256 = vst [vmem:[%s1593_s27 + $0x1b8] sm:$0xff] %v255_v55  ;;  %v383_v55 = vld [vmem:[%s1588_s26 + $0x760] sm:$0xff] }
  0x4d   : > { %258 = vst [vmem:[%s1593_s27 + $0x1c0] sm:$0xff] %v257_v56  ;;  %v385_v56 = vld [vmem:[%s1588_s26 + $0x768] sm:$0xff] }
  0x4e   : > { %260 = vst [vmem:[%s1593_s27 + $0x1c8] sm:$0xff] %v259_v57  ;;  %v387_v57 = vld [vmem:[%s1588_s26 + $0x770] sm:$0xff] }
  0x4f   : > { %262 = vst [vmem:[%s1593_s27 + $0x1d0] sm:$0xff] %v261_v58  ;;  %v389_v58 = vld [vmem:[%s1588_s26 + $0x778] sm:$0xff] }
  0x50   : > { %264 = vst [vmem:[%s1593_s27 + $0x1d8] sm:$0xff] %v263_v59  ;;  %v391_v59 = vld [vmem:[%s1588_s26 + $0x780] sm:$0xff] }
  0x51   : > { %266 = vst [vmem:[%s1593_s27 + $0x1e0] sm:$0xff] %v265_v60  ;;  %v393_v60 = vld [vmem:[%s1588_s26 + $0x788] sm:$0xff] }
  0x52   : > { %268 = vst [vmem:[%s1593_s27 + $0x1e8] sm:$0xff] %v267_v61  ;;  %v395_v61 = vld [vmem:[%s1588_s26 + $0x790] sm:$0xff] }
  0x53   : > { %270 = vst [vmem:[%s1593_s27 + $0x1f0] sm:$0xff] %v269_v62  ;;  %v397_v62 = vld [vmem:[%s1588_s26 + $0x7e0] sm:$0xff] }
  0x54   : > { %272 = vst [vmem:[%s1593_s27 + $0x1f8] sm:$0xff] %v271_v63  ;;  %v399_v63 = vld [vmem:[%s1588_s26 + $0x7e8] sm:$0xff] }
  0x55   : > { %274 = vst [vmem:[%s1593_s27 + $0x200] sm:$0xff] %v273_v0  ;;  %v401_v0 = vld [vmem:[%s1588_s26 + $0x7f0] sm:$0xff] }
  0x56   : > { %276 = vst [vmem:[%s1593_s27 + $0x208] sm:$0xff] %v275_v1  ;;  %v403_v1 = vld [vmem:[%s1588_s26 + $0x7f8] sm:$0xff] }
  0x57   : > { %278 = vst [vmem:[%s1593_s27 + $0x210] sm:$0xff] %v277_v2  ;;  %v405_v2 = vld [vmem:[%s1588_s26 + $0x800] sm:$0xff] }
  0x58   : > { %280 = vst [vmem:[%s1593_s27 + $0x218] sm:$0xff] %v279_v3  ;;  %v407_v3 = vld [vmem:[%s1588_s26 + $0x808] sm:$0xff] }
  0x59   : > { %282 = vst [vmem:[%s1593_s27 + $0x220] sm:$0xff] %v281_v4  ;;  %v409_v4 = vld [vmem:[%s1588_s26 + $0x810] sm:$0xff] }
  0x5a   : > { %284 = vst [vmem:[%s1593_s27 + $0x228] sm:$0xff] %v283_v5  ;;  %v411_v5 = vld [vmem:[%s1588_s26 + $0x818] sm:$0xff] }
  0x5b   : > { %286 = vst [vmem:[%s1593_s27 + $0x230] sm:$0xff] %v285_v6  ;;  %v413_v6 = vld [vmem:[%s1588_s26 + $0x820] sm:$0xff] }
  0x5c   : > { %288 = vst [vmem:[%s1593_s27 + $0x238] sm:$0xff] %v287_v7  ;;  %v415_v7 = vld [vmem:[%s1588_s26 + $0x870] sm:$0xff] }
  0x5d   : > { %290 = vst [vmem:[%s1593_s27 + $0x240] sm:$0xff] %v289_v8  ;;  %v417_v8 = vld [vmem:[%s1588_s26 + $0x878] sm:$0xff] }
  0x5e   : > { %292 = vst [vmem:[%s1593_s27 + $0x248] sm:$0xff] %v291_v9  ;;  %v419_v9 = vld [vmem:[%s1588_s26 + $0x880] sm:$0xff] }
  0x5f   : > { %294 = vst [vmem:[%s1593_s27 + $0x250] sm:$0xff] %v293_v10  ;;  %v421_v10 = vld [vmem:[%s1588_s26 + $0x888] sm:$0xff] }
  0x60   : > { %296 = vst [vmem:[%s1593_s27 + $0x258] sm:$0xff] %v295_v11  ;;  %v423_v11 = vld [vmem:[%s1588_s26 + $0x890] sm:$0xff] }
  0x61   : > { %298 = vst [vmem:[%s1593_s27 + $0x260] sm:$0xff] %v297_v12  ;;  %v425_v12 = vld [vmem:[%s1588_s26 + $0x898] sm:$0xff] }
  0x62   : > { %300 = vst [vmem:[%s1593_s27 + $0x268] sm:$0xff] %v299_v13  ;;  %v427_v13 = vld [vmem:[%s1588_s26 + $0x8a0] sm:$0xff] }
  0x63   : > { %302 = vst [vmem:[%s1593_s27 + $0x270] sm:$0xff] %v301_v14  ;;  %v429_v14 = vld [vmem:[%s1588_s26 + $0x8a8] sm:$0xff] }
  0x64   : > { %304 = vst [vmem:[%s1593_s27 + $0x278] sm:$0xff] %v303_v15  ;;  %v431_v15 = vld [vmem:[%s1588_s26 + $0x8b0] sm:$0xff] }
  0x65   : > { %306 = vst [vmem:[%s1593_s27 + $0x280] sm:$0xff] %v305_v16  ;;  %v433_v16 = vld [vmem:[%s1588_s26 + $0x900] sm:$0xff] }
  0x66   : > { %308 = vst [vmem:[%s1593_s27 + $0x288] sm:$0xff] %v307_v17  ;;  %v435_v17 = vld [vmem:[%s1588_s26 + $0x908] sm:$0xff] }
  0x67   : > { %310 = vst [vmem:[%s1593_s27 + $0x290] sm:$0xff] %v309_v18  ;;  %v437_v18 = vld [vmem:[%s1588_s26 + $0x910] sm:$0xff] }
  0x68   : > { %312 = vst [vmem:[%s1593_s27 + $0x298] sm:$0xff] %v311_v19  ;;  %v439_v19 = vld [vmem:[%s1588_s26 + $0x918] sm:$0xff] }
  0x69   : > { %314 = vst [vmem:[%s1593_s27 + $0x2a0] sm:$0xff] %v313_v20  ;;  %v441_v20 = vld [vmem:[%s1588_s26 + $0x920] sm:$0xff] }
  0x6a   : > { %316 = vst [vmem:[%s1593_s27 + $0x2a8] sm:$0xff] %v315_v21  ;;  %v443_v21 = vld [vmem:[%s1588_s26 + $0x928] sm:$0xff] }
  0x6b   : > { %318 = vst [vmem:[%s1593_s27 + $0x2b0] sm:$0xff] %v317_v22  ;;  %v445_v22 = vld [vmem:[%s1588_s26 + $0x930] sm:$0xff] }
  0x6c   : > { %320 = vst [vmem:[%s1593_s27 + $0x2b8] sm:$0xff] %v319_v23  ;;  %v447_v23 = vld [vmem:[%s1588_s26 + $0x938] sm:$0xff] }
  0x6d   : > { %322 = vst [vmem:[%s1593_s27 + $0x2c0] sm:$0xff] %v321_v24  ;;  %v449_v24 = vld [vmem:[%s1588_s26 + $0x940] sm:$0xff] }
  0x6e   : > { %324 = vst [vmem:[%s1593_s27 + $0x2c8] sm:$0xff] %v323_v25  ;;  %v451_v25 = vld [vmem:[%s1588_s26 + $0x990] sm:$0xff] }
  0x6f   : > { %326 = vst [vmem:[%s1593_s27 + $0x2d0] sm:$0xff] %v325_v26  ;;  %v453_v26 = vld [vmem:[%s1588_s26 + $0x998] sm:$0xff] }
  0x70   : > { %328 = vst [vmem:[%s1593_s27 + $0x2d8] sm:$0xff] %v327_v27  ;;  %v455_v27 = vld [vmem:[%s1588_s26 + $0x9a0] sm:$0xff] }
  0x71   : > { %330 = vst [vmem:[%s1593_s27 + $0x2e0] sm:$0xff] %v329_v28  ;;  %v457_v28 = vld [vmem:[%s1588_s26 + $0x9a8] sm:$0xff] }
  0x72   : > { %332 = vst [vmem:[%s1593_s27 + $0x2e8] sm:$0xff] %v331_v29  ;;  %v459_v29 = vld [vmem:[%s1588_s26 + $0x9b0] sm:$0xff] }
  0x73   : > { %334 = vst [vmem:[%s1593_s27 + $0x2f0] sm:$0xff] %v333_v30  ;;  %v461_v30 = vld [vmem:[%s1588_s26 + $0x9b8] sm:$0xff] }
  0x74   : > { %336 = vst [vmem:[%s1593_s27 + $0x2f8] sm:$0xff] %v335_v31  ;;  %v463_v31 = vld [vmem:[%s1588_s26 + $0x9c0] sm:$0xff] }
  0x75   : > { %338 = vst [vmem:[%s1593_s27 + $0x300] sm:$0xff] %v337_v32  ;;  %v465_v32 = vld [vmem:[%s1588_s26 + $0x9c8] sm:$0xff] }
  0x76   : > { %340 = vst [vmem:[%s1593_s27 + $0x308] sm:$0xff] %v339_v33  ;;  %v467_v33 = vld [vmem:[%s1588_s26 + $0x9d0] sm:$0xff] }
  0x77   : > { %342 = vst [vmem:[%s1593_s27 + $0x310] sm:$0xff] %v341_v34 }
  0x78   : > { %344 = vst [vmem:[%s1593_s27 + $0x318] sm:$0xff] %v343_v35 }
  0x79   : > { %346 = vst [vmem:[%s1593_s27 + $0x320] sm:$0xff] %v345_v36 }
  0x7a   : > { %348 = vst [vmem:[%s1593_s27 + $0x328] sm:$0xff] %v347_v37 }
  0x7b   : > { %350 = vst [vmem:[%s1593_s27 + $0x330] sm:$0xff] %v349_v38 }
  0x7c   : > { %352 = vst [vmem:[%s1593_s27 + $0x338] sm:$0xff] %v351_v39 }
  0x7d   : > { %354 = vst [vmem:[%s1593_s27 + $0x340] sm:$0xff] %v353_v40 }
  0x7e   : > { %356 = vst [vmem:[%s1593_s27 + $0x348] sm:$0xff] %v355_v41 }
  0x7f   : > { %358 = vst [vmem:[%s1593_s27 + $0x350] sm:$0xff] %v357_v42 }
  0x80   : > { %360 = vst [vmem:[%s1593_s27 + $0x358] sm:$0xff] %v359_v43 }
  0x81   : > { %362 = vst [vmem:[%s1593_s27 + $0x360] sm:$0xff] %v361_v44 }
  0x82   : > { %364 = vst [vmem:[%s1593_s27 + $0x368] sm:$0xff] %v363_v45 }
  0x83   : > { %366 = vst [vmem:[%s1593_s27 + $0x370] sm:$0xff] %v365_v46 }
  0x84   : > { %368 = vst [vmem:[%s1593_s27 + $0x378] sm:$0xff] %v367_v47 }
  0x85   : > { %370 = vst [vmem:[%s1593_s27 + $0x380] sm:$0xff] %v369_v48 }
  0x86   : > { %372 = vst [vmem:[%s1593_s27 + $0x388] sm:$0xff] %v371_v49 }
  0x87   : > { %374 = vst [vmem:[%s1593_s27 + $0x390] sm:$0xff] %v373_v50 }
  0x88   : > { %376 = vst [vmem:[%s1593_s27 + $0x398] sm:$0xff] %v375_v51 }
  0x89   : > { %378 = vst [vmem:[%s1593_s27 + $0x3a0] sm:$0xff] %v377_v52 }
  0x8a   : > { %380 = vst [vmem:[%s1593_s27 + $0x3a8] sm:$0xff] %v379_v53 }
  0x8b   : > { %382 = vst [vmem:[%s1593_s27 + $0x3b0] sm:$0xff] %v381_v54 }
  0x8c   : > { %384 = vst [vmem:[%s1593_s27 + $0x3b8] sm:$0xff] %v383_v55 }
  0x8d   : > { %386 = vst [vmem:[%s1593_s27 + $0x3c0] sm:$0xff] %v385_v56 }
  0x8e   : > { %388 = vst [vmem:[%s1593_s27 + $0x3c8] sm:$0xff] %v387_v57 }
  0x8f   : > { %390 = vst [vmem:[%s1593_s27 + $0x3d0] sm:$0xff] %v389_v58 }
  0x90   : > { %392 = vst [vmem:[%s1593_s27 + $0x3d8] sm:$0xff] %v391_v59 }
  0x91   : > { %394 = vst [vmem:[%s1593_s27 + $0x3e0] sm:$0xff] %v393_v60 }
  0x92   : > { %396 = vst [vmem:[%s1593_s27 + $0x3e8] sm:$0xff] %v395_v61 }
  0x93   : > { %398 = vst [vmem:[%s1593_s27 + $0x3f0] sm:$0xff] %v397_v62 }
  0x94   : > { %400 = vst [vmem:[%s1593_s27 + $0x3f8] sm:$0xff] %v399_v63 }
  0x95   : > { %402 = vst [vmem:[%s1593_s27 + $0x400] sm:$0xff] %v401_v0 }
  0x96   : > { %404 = vst [vmem:[%s1593_s27 + $0x408] sm:$0xff] %v403_v1 }
  0x97   : > { %406 = vst [vmem:[%s1593_s27 + $0x410] sm:$0xff] %v405_v2 }
  0x98   : > { %408 = vst [vmem:[%s1593_s27 + $0x418] sm:$0xff] %v407_v3 }
  0x99   : > { %410 = vst [vmem:[%s1593_s27 + $0x420] sm:$0xff] %v409_v4 }
  0x9a   : > { %412 = vst [vmem:[%s1593_s27 + $0x428] sm:$0xff] %v411_v5 }
  0x9b   : > { %414 = vst [vmem:[%s1593_s27 + $0x430] sm:$0xff] %v413_v6 }
  0x9c   : > { %416 = vst [vmem:[%s1593_s27 + $0x438] sm:$0xff] %v415_v7 }
  0x9d   : > { %418 = vst [vmem:[%s1593_s27 + $0x440] sm:$0xff] %v417_v8 }
  0x9e   : > { %420 = vst [vmem:[%s1593_s27 + $0x448] sm:$0xff] %v419_v9 }
  0x9f   : > { %422 = vst [vmem:[%s1593_s27 + $0x450] sm:$0xff] %v421_v10 }
  0xa0   : > { %424 = vst [vmem:[%s1593_s27 + $0x458] sm:$0xff] %v423_v11 }
  0xa1   : > { %426 = vst [vmem:[%s1593_s27 + $0x460] sm:$0xff] %v425_v12 }
  0xa2   : > { %428 = vst [vmem:[%s1593_s27 + $0x468] sm:$0xff] %v427_v13 }
  0xa3   : > { %430 = vst [vmem:[%s1593_s27 + $0x470] sm:$0xff] %v429_v14 }
  0xa4   : > { %432 = vst [vmem:[%s1593_s27 + $0x478] sm:$0xff] %v431_v15 }
  0xa5   : > { %434 = vst [vmem:[%s1593_s27 + $0x480] sm:$0xff] %v433_v16 }
  0xa6   : > { %436 = vst [vmem:[%s1593_s27 + $0x488] sm:$0xff] %v435_v17 }
  0xa7   : > { %438 = vst [vmem:[%s1593_s27 + $0x490] sm:$0xff] %v437_v18 }
  0xa8   : > { %440 = vst [vmem:[%s1593_s27 + $0x498] sm:$0xff] %v439_v19 }
  0xa9   : > { %442 = vst [vmem:[%s1593_s27 + $0x4a0] sm:$0xff] %v441_v20 }
  0xaa   : > { %444 = vst [vmem:[%s1593_s27 + $0x4a8] sm:$0xff] %v443_v21 }
  0xab   : > { %446 = vst [vmem:[%s1593_s27 + $0x4b0] sm:$0xff] %v445_v22 }
  0xac   : > { %448 = vst [vmem:[%s1593_s27 + $0x4b8] sm:$0xff] %v447_v23 }
  0xad   : > { %450 = vst [vmem:[%s1593_s27 + $0x4c0] sm:$0xff] %v449_v24 }
  0xae   : > { %452 = vst [vmem:[%s1593_s27 + $0x4c8] sm:$0xff] %v451_v25 }
  0xaf   : > { %454 = vst [vmem:[%s1593_s27 + $0x4d0] sm:$0xff] %v453_v26 }
  0xb0   : > { %456 = vst [vmem:[%s1593_s27 + $0x4d8] sm:$0xff] %v455_v27 }
  0xb1   : > { %458 = vst [vmem:[%s1593_s27 + $0x4e0] sm:$0xff] %v457_v28 }
  0xb2   : > { %460 = vst [vmem:[%s1593_s27 + $0x4e8] sm:$0xff] %v459_v29 }
  0xb3   : > { %462 = vst [vmem:[%s1593_s27 + $0x4f0] sm:$0xff] %v461_v30 }
  0xb4   : > { %464 = vst [vmem:[%s1593_s27 + $0x4f8] sm:$0xff] %v463_v31 }
  0xb5   : > { %466 = vst [vmem:[%s1593_s27 + $0x500] sm:$0xff] %v465_v32 }
  0xb6   : > { %468 = vst [vmem:[%s1593_s27 + $0x508] sm:$0xff] %v467_v33 }
  0xb7 PF: > { %474 = sbr.rel (!%p1566_p3) target bundleno = 203 (0xcb), region = 43  ;;  %s476_s28 = sand.u32 (%p1566_p3), 1, %s1501_s10  }
  0xb8   : > { %s1407_s29 = smul.u32 (%p1566_p3), 36, %s1509_s12 }
  0xb9   : > { %s1410_s30 = smul.u32 (%p1566_p3), 108, %s476_s28 }
  0xba   : > { %s481_s5 = scalar_lea.vmem (%p1566_p3), %s2331_s1, %s1407_s29 }
  0xbb   : > { %v496_v34 = vld [vmem:[%s481_s5] sm:$0xff] (%p1566_p3)  ;;  %v498_v35 = vld [vmem:[%s481_s5 + $0x8] sm:$0xff] (%p1566_p3)  ;;  %v500_v36 = vld [vmem:[%s481_s5 + $0x10] sm:$0xff] (%p1566_p3)  ;;  %s478_s6 = scalar_lea.vmem (%p1566_p3), [#allocation3], %s1410_s30 }
  0xbc   : > { %497 = vst [vmem:[%s478_s6] sm:$0xff] %v496_v34  ;;  %v502_v37 = vld [vmem:[%s481_s5 + $0x18] sm:$0xff]  ;;  %v504_v38 = vld [vmem:[%s481_s5 + $0x48] sm:$0xff]  ;;  %v506_v39 = vld [vmem:[%s481_s5 + $0x50] sm:$0xff] }
  0xbd   : > { %499 = vst [vmem:[%s478_s6 + $0x8] sm:$0xff] %v498_v35  ;;  %v508_v40 = vld [vmem:[%s481_s5 + $0x58] sm:$0xff]  ;;  %v510_v41 = vld [vmem:[%s481_s5 + $0x60] sm:$0xff]  ;;  %v512_v42 = vld [vmem:[%s481_s5 + $0x90] sm:$0xff] }
  0xbe   : > { %501 = vst [vmem:[%s478_s6 + $0x10] sm:$0xff] %v500_v36  ;;  %v514_v43 = vld [vmem:[%s481_s5 + $0x98] sm:$0xff]  ;;  %v516_v44 = vld [vmem:[%s481_s5 + $0xa0] sm:$0xff]  ;;  %v518_v45 = vld [vmem:[%s481_s5 + $0xa8] sm:$0xff] }
  0xbf   : > { %503 = vst [vmem:[%s478_s6 + $0x18] sm:$0xff] %v502_v37  ;;  %v1326_v46 = vld [vmem:[%s481_s5 + $0x20] sm:$0xf]  ;;  %v1328_v47 = vld [vmem:[%s481_s5 + $0x68] sm:$0xf] }
  0xc0   : > { %505 = vst [vmem:[%s478_s6 + $0x24] sm:$0xff] %v504_v38  ;;  %v1330_v48 = vld [vmem:[%s481_s5 + $0xb0] sm:$0xf] }
  0xc1   : > { %507 = vst [vmem:[%s478_s6 + $0x2c] sm:$0xff] %v506_v39 }
  0xc2   : > { %509 = vst [vmem:[%s478_s6 + $0x34] sm:$0xff] %v508_v40 }
  0xc3   : > { %511 = vst [vmem:[%s478_s6 + $0x3c] sm:$0xff] %v510_v41 }
  0xc4   : > { %513 = vst [vmem:[%s478_s6 + $0x48] sm:$0xff] %v512_v42 }
  0xc5   : > { %515 = vst [vmem:[%s478_s6 + $0x50] sm:$0xff] %v514_v43 }
  0xc6   : > { %517 = vst [vmem:[%s478_s6 + $0x58] sm:$0xff] %v516_v44 }
  0xc7   : > { %519 = vst [vmem:[%s478_s6 + $0x60] sm:$0xff] %v518_v45 }
  0xc8   : > { %1327 = vst [vmem:[%s478_s6 + $0x20] sm:$0xf] %v1326_v46 }
  0xc9   : > { %1329 = vst [vmem:[%s478_s6 + $0x44] sm:$0xf] %v1328_v47 }
  0xca   : > { %1331 = vst [vmem:[%s478_s6 + $0x68] sm:$0xf] %v1330_v48 }
  0xcb PF: > { %p1332_p8 = scmp.ge.s32.totalorder %s1513_s13, 1  ;;  %p538_p9 = scmp.lt.s32.totalorder %s1513_s13, 3 }
  0xcd   : > { %p539_p10 = pnand %p1332_p8, %p538_p9 }
  0xce   : > { %s545_s7 = sand.u32 (!%p539_p10), 1, %s1497_s9   ;;  %s1932_s22 = smov (!%p539_p10), 0  }
  0xcf   : > { %542 = sbr.rel (%p539_p10) target bundleno = 357 (0x165), region = 69 }
  0xd0   : > { %s1411_s8 = smul.u32 (!%p539_p10), 1296, %s545_s7 }
  0xd1   : > { %s1412_s15 = smul.u32 (!%p539_p10), 108, %s545_s7 }
  0xd2   : > { %s1413_s16 = smul.u32 (!%p539_p10), 504, %s545_s7  ;;  %s1926_s17 = scalar_lea.vmem (!%p539_p10), [#allocation2], %s1411_s8 }
  0xd3   : > { %s1928_s18 = scalar_lea.vmem (!%p539_p10), [#allocation3], %s1412_s15 }
  0xd4   : > { %s1930_s21 = scalar_lea.vmem [#allocation4], %s1413_s16 }
  0xd5 LB: >> { %s1333_s9 = sshll.u32 %s1517_s22, 7  ;;  %vm715_vm0 = vcmask 1045504   ;;  %s584_s22 = sadd.s32 1, %s1517_s22   ;;  %s1517_s22 = sphi %s1932_s22, %s584_s22  }
  0xd6   : >> { %s1938_s23 = sshra.s32 %s1333_s9, 7  ;;  %p581_p11 = scmp.ge.s32.totalorder %s584_s22, 9  }
  0xd7   : >> { %s1334_s24 = sshll.u32 %s1938_s23, 2  ;;  %s1343_s25 = sshll.u32 %s1938_s23, 3 }
  0xd8   : >> { %s1943_s26 = scalar_lea.vmem %s1928_s18, %s1334_s24 [#allocation3]  ;;  %s1948_s27 = scalar_lea.vmem %s1926_s17, %s1343_s25 [#allocation2] }
  0xd9   : >> { %v607_v49 = vld [vmem:[%s1948_s27] sm:$0x7f]  ;;  %v673_v54 = vld [vmem:[%s1948_s27 + $0x48] sm:$0x1]  ;;  %v1352_v59 = vld [vmem:[%s1948_s27 + $0x90] sm:$0xfe]  ;;  %s2045_s28 = scalar_lea.vmem %s1930_s21, %s1343_s25 [#allocation4] }
  0xda   : >> { %v1952_v50 = vld [vmem:[%s1943_s26] ss:$0 sm:$0xff]  ;;  %v629_v51 = vld [vmem:[%s1948_s27] sm:$0xfe]  ;;  %v1359_v61 = vld [vmem:[%s1948_s27 + $0x90] sm:$0xfc] }
  0xdb   : >> { %v1956_v52 = vld [vmem:[%s1943_s26 + $0x1] ss:$0 sm:$0xff]  ;;  %v672_v53 = vld [vmem:[%s1948_s27] sm:$0xfc]  ;;  %v615_v57 = vmul.f32 %v1952_v50, %v607_v49  ;;  %v1345_v0 = vld [vmem:[%s1948_s27 + $0x90] sm:$0x7f] }
  0xdc   : >> { %v1961_v55 = vld [vmem:[%s1943_s26 + $0x2] ss:$0 sm:$0xff]  ;;  %v1964_v56 = vld [vmem:[%s1943_s26 + $0x24] ss:$0 sm:$0xff]  ;;  %v637_v58 = vmul.f32 %v1956_v52, %v629_v51  ;;  %v1970_v60 = vld [vmem:[%s1943_s26 + $0x25] ss:$0 sm:$0xff] }
  0xdd   : >> { %v687_v62 = vmul.f32 %v1961_v55, %v672_v53  ;;  %v688_v63 = vmul.f32 %v1961_v55, %v673_v54  ;;  %v1360_v1 = vld [vmem:[%s1948_s27 + $0xd8] sm:$0x1]  ;;  %v1978_v2 = vld [vmem:[%s1943_s26 + $0x26] ss:$0 sm:$0xff]  ;;  %v783_v4 = vmul.f32 %v1970_v60, %v1352_v59  ;;  %v1982_v5 = vld [vmem:[%s1943_s26 + $0x48] ss:$0 sm:$0xff]  ;;  %v761_v14 = vmul.f32 %v1964_v56, %v1345_v0 }
  0xde   : >> { %v651_v3 = vrot.slane %v637_v58, 1  ;;  %v1381_v6 = vld [vmem:[%s1948_s27 + $0x120] sm:$0xfe]  ;;  %v833_v9 = vmul.f32 %v1978_v2, %v1359_v61  ;;  %v834_v10 = vmul.f32 %v1978_v2, %v1360_v1  ;;  %v1988_v11 = vld [vmem:[%s1943_s26 + $0x49] ss:$0 sm:$0xff] }
  0xdf   : >> { %v716_v7 = vrot.slane %v687_v62, 2  ;;  %v717_v8 = vrot.slane %v688_v63, 2  ;;  %v1388_v12 = vld [vmem:[%s1948_s27 + $0x120] sm:$0xfc]  ;;  %v1389_v16 = vld [vmem:[%s1948_s27 + $0x168] sm:$0x1]  ;;  %v929_v21 = vmul.f32 %v1988_v11, %v1381_v6 }
  0xe0   : >> { %v665_v13 = vadd.f32 %v651_v3, %v615_v57  ;;  %v1374_v15 = vld [vmem:[%s1948_s27 + $0x120] sm:$0x7f]  ;;  %v1995_v17 = vld [vmem:[%s1943_s26 + $0x4a] ss:$0 sm:$0xff]  ;;  %v861_v19 = vrot.slane %v833_v9, 2  ;;  %v862_v20 = vrot.slane %v834_v10, 2 }
  0xe1   : >> { %v718_v18 = vsel %vm715_vm0, %v716_v7, %v717_v8  ;;  %v608_v22 = vld [vmem:[%s1948_s27 + $0x90] sm:$0x7f]  ;;  %v797_v25 = vrot.slane %v783_v4, 1  ;;  %v979_v26 = vmul.f32 %v1995_v17, %v1388_v12  ;;  %v980_v27 = vmul.f32 %v1995_v17, %v1389_v16  ;;  %v675_v29 = vld [vmem:[%s1948_s27 + $0xd8] sm:$0x1] }
  0xe2   : >> { %v630_v23 = vld [vmem:[%s1948_s27 + $0x90] sm:$0xfe]  ;;  %v744_v24 = vadd.f32 %v718_v18, %v665_v13  ;;  %v907_v30 = vmul.f32 %v1982_v5, %v1374_v15  ;;  %v616_v31 = vmul.f32 %v1952_v50, %v608_v22  ;;  %v1353_v34 = vld [vmem:[%s1948_s27 + $0x120] sm:$0xfe]  ;;  %v863_v37 = vsel %vm715_vm0, %v861_v19, %v862_v20  ;;  %v1362_v41 = vld [vmem:[%s1948_s27 + $0x168] sm:$0x1] }
  0xe3   : >> { %v674_v28 = vld [vmem:[%s1948_s27 + $0x90] sm:$0xfc]  ;;  %v638_v32 = vmul.f32 %v1956_v52, %v630_v23  ;;  %v1361_v35 = vld [vmem:[%s1948_s27 + $0x120] sm:$0xfc]  ;;  %v943_v38 = vrot.slane %v929_v21, 1  ;;  %v690_v39 = vmul.f32 %v1961_v55, %v675_v29  ;;  %v1007_v42 = vrot.slane %v979_v26, 2 }
  0xe4   : >> { %v689_v33 = vmul.f32 %v1961_v55, %v674_v28  ;;  %v768_v36 = vadd.f32 %v761_v14, %v744_v24  ;;  %v1346_v40 = vld [vmem:[%s1948_s27 + $0x120] sm:$0x7f]  ;;  %v784_v45 = vmul.f32 %v1970_v60, %v1353_v34  ;;  %v1382_v46 = vld [vmem:[%s1948_s27 + $0x1b0] sm:$0xfe]  ;;  %v1008_v48 = vrot.slane %v980_v27, 2 }
  0xe5   : >> { %v652_v43 = vrot.slane %v638_v32, 1  ;;  %v720_v49 = vrot.slane %v690_v39, 2  ;;  %v835_v51 = vmul.f32 %v1978_v2, %v1361_v35  ;;  %v1390_v53 = vld [vmem:[%s1948_s27 + $0x1b0] sm:$0xfc]  ;;  %v1391_v54 = vld [vmem:[%s1948_s27 + $0x1f8] sm:$0x1]  ;;  %v762_v58 = vmul.f32 %v1964_v56, %v1346_v40 }
  0xe6   : >> { %v719_v44 = vrot.slane %v689_v33, 2  ;;  %v811_v47 = vadd.f32 %v797_v25, %v768_v36  ;;  %v798_v59 = vrot.slane %v784_v45, 1  ;;  %v836_v61 = vmul.f32 %v1978_v2, %v1362_v41  ;;  %v609_v62 = vld [vmem:[%s1948_s27 + $0x120] sm:$0x7f]  ;;  %v1375_v4 = vld [vmem:[%s1948_s27 + $0x1b0] sm:$0x7f] }
  0xe7   : >> { %v666_v57 = vadd.f32 %v652_v43, %v616_v31  ;;  %v631_v63 = vld [vmem:[%s1948_s27 + $0x120] sm:$0xfe]  ;;  %v864_v3 = vrot.slane %v835_v51, 2  ;;  %v930_v6 = vmul.f32 %v1988_v11, %v1382_v46  ;;  %v981_v9 = vmul.f32 %v1995_v17, %v1390_v53  ;;  %v677_v13 = vld [vmem:[%s1948_s27 + $0x168] sm:$0x1] }
  0xe8   : >> { %v889_v0 = vadd.f32 %v863_v37, %v811_v47  ;;  %v721_v1 = vsel %vm715_vm0, %v719_v44, %v720_v49  ;;  %v865_v8 = vrot.slane %v836_v61, 2  ;;  %v982_v10 = vmul.f32 %v1995_v17, %v1391_v54  ;;  %v676_v12 = vld [vmem:[%s1948_s27 + $0x120] sm:$0xfc]  ;;  %v1354_v19 = vld [vmem:[%s1948_s27 + $0x1b0] sm:$0xfe] }
  0xe9   : >> { %v745_v7 = vadd.f32 %v721_v1, %v666_v57  ;;  %v1009_v15 = vsel %vm715_vm0, %v1007_v42, %v1008_v48  ;;  %v617_v16 = vmul.f32 %v1952_v50, %v609_v62  ;;  %v639_v18 = vmul.f32 %v1956_v52, %v631_v63  ;;  %v1347_v24 = vld [vmem:[%s1948_s27 + $0x1b0] sm:$0x7f]  ;;  %v1383_v35 = vld [vmem:[%s1948_s27 + $0x240] sm:$0xfe]  ;;  %v1393_v46 = vld [vmem:[%s1948_s27 + $0x288] sm:$0x1] }
  0xea   : >> { %v914_v14 = vadd.f32 %v907_v30, %v889_v0  ;;  %v866_v21 = vsel %vm715_vm0, %v864_v3, %v865_v8  ;;  %v908_v22 = vmul.f32 %v1982_v5, %v1375_v4  ;;  %v944_v23 = vrot.slane %v930_v6, 1  ;;  %v1363_v29 = vld [vmem:[%s1948_s27 + $0x1b0] sm:$0xfc]  ;;  %v1364_v30 = vld [vmem:[%s1948_s27 + $0x1f8] sm:$0x1] }
  0xeb   : >> { %v769_v20 = vadd.f32 %v762_v58, %v745_v7  ;;  %v653_v26 = vrot.slane %v639_v18, 1  ;;  %v691_v27 = vmul.f32 %v1961_v55, %v676_v12  ;;  %v692_v28 = vmul.f32 %v1961_v55, %v677_v13  ;;  %v1392_v36 = vld [vmem:[%s1948_s27 + $0x240] sm:$0xfc]  ;;  %v610_v53 = vld [vmem:[%s1948_s27 + $0x1b0] sm:$0x7f] }
  0xec   : >> { %v957_v25 = vadd.f32 %v943_v38, %v914_v14  ;;  %v1010_v32 = vrot.slane %v981_v9, 2  ;;  %v1011_v33 = vrot.slane %v982_v10, 2  ;;  %v785_v34 = vmul.f32 %v1970_v60, %v1354_v19  ;;  %v1376_v45 = vld [vmem:[%s1948_s27 + $0x240] sm:$0x7f]  ;;  %v632_v54 = vld [vmem:[%s1948_s27 + $0x1b0] sm:$0xfe] }
  0xed   : >> { %v812_v31 = vadd.f32 %v798_v59, %v769_v20  ;;  %v667_v38 = vadd.f32 %v653_v26, %v617_v16  ;;  %v722_v39 = vrot.slane %v691_v27, 2  ;;  %v723_v40 = vrot.slane %v692_v28, 2  ;;  %v678_v62 = vld [vmem:[%s1948_s27 + $0x1b0] sm:$0xfc]  ;;  %v679_v63 = vld [vmem:[%s1948_s27 + $0x1f8] sm:$0x1] }
  0xee   : >> { %v1035_v37 = vadd.f32 %v1009_v15, %v957_v25  ;;  %v763_v42 = vmul.f32 %v1964_v56, %v1347_v24  ;;  %v837_v43 = vmul.f32 %v1978_v2, %v1363_v29  ;;  %v838_v44 = vmul.f32 %v1978_v2, %v1364_v30  ;;  %v1355_v6 = vld [vmem:[%s1948_s27 + $0x240] sm:$0xfe]  ;;  %v1366_v19 = vld [vmem:[%s1948_s27 + $0x288] sm:$0x1]  ;;  %v1384_v24 = vld [vmem:[%s1948_s27 + $0x2d0] sm:$0xfe] }
  0xef   : >> { %v890_v41 = vadd.f32 %v866_v21, %v812_v31  ;;  %v724_v47 = vsel %vm715_vm0, %v722_v39, %v723_v40  ;;  %v799_v48 = vrot.slane %v785_v34, 1  ;;  %v931_v49 = vmul.f32 %v1988_v11, %v1383_v35  ;;  %v1365_v12 = vld [vmem:[%s1948_s27 + $0x240] sm:$0xfc]  ;;  %v1394_v25 = vld [vmem:[%s1948_s27 + $0x2d0] sm:$0xfc] }
  0xf0   : >> { %1044 = vst [vmem:[%s2045_s28] sm:$0x7f] %v1035_v37  ;;  %v983_v51 = vmul.f32 %v1995_v17, %v1392_v36  ;;  %v746_v58 = vadd.f32 %v724_v47, %v667_v38  ;;  %v867_v59 = vrot.slane %v837_v43, 2  ;;  %v868_v61 = vrot.slane %v838_v44, 2  ;;  %v1348_v18 = vld [vmem:[%s1948_s27 + $0x240] sm:$0x7f] }
  0xf1   : >> { %v915_v57 = vadd.f32 %v908_v22, %v890_v41  ;;  %v1012_v0 = vsel %vm715_vm0, %v1010_v32, %v1011_v33  ;;  %v909_v1 = vmul.f32 %v1982_v5, %v1376_v45  ;;  %v945_v3 = vrot.slane %v931_v49, 1  ;;  %v1395_v30 = vld [vmem:[%s1948_s27 + $0x318] sm:$0x1]  ;;  %v611_v35 = vld [vmem:[%s1948_s27 + $0x240] sm:$0x7f] }
  0xf2   : >> { %v984_v4 = vmul.f32 %v1995_v17, %v1393_v46  ;;  %v770_v8 = vadd.f32 %v763_v42, %v746_v58  ;;  %v618_v9 = vmul.f32 %v1952_v50, %v610_v53  ;;  %v640_v10 = vmul.f32 %v1956_v52, %v632_v54  ;;  %v633_v36 = vld [vmem:[%s1948_s27 + $0x240] sm:$0xfe]  ;;  %v1377_v40 = vld [vmem:[%s1948_s27 + $0x2d0] sm:$0x7f]  ;;  %v681_v47 = vld [vmem:[%s1948_s27 + $0x288] sm:$0x1] }
  0xf3   : >> { %v958_v7 = vadd.f32 %v944_v23, %v915_v57  ;;  %v869_v13 = vsel %vm715_vm0, %v867_v59, %v868_v61  ;;  %v1013_v14 = vrot.slane %v983_v51, 2  ;;  %v693_v15 = vmul.f32 %v1961_v55, %v678_v62  ;;  %v680_v46 = vld [vmem:[%s1948_s27 + $0x240] sm:$0xfc]  ;;  %v1356_v54 = vld [vmem:[%s1948_s27 + $0x2d0] sm:$0xfe] }
  0xf4   : >> { %v694_v16 = vmul.f32 %v1961_v55, %v679_v63  ;;  %v813_v21 = vadd.f32 %v799_v48, %v770_v8  ;;  %v654_v22 = vrot.slane %v640_v10, 1  ;;  %v786_v23 = vmul.f32 %v1970_v60, %v1355_v6  ;;  %v1349_v62 = vld [vmem:[%s1948_s27 + $0x2d0] sm:$0x7f] }
  0xf5   : >> { %v1036_v20 = vadd.f32 %v1012_v0, %v958_v7  ;;  %v1014_v26 = vrot.slane %v984_v4, 2  ;;  %v725_v27 = vrot.slane %v693_v15, 2  ;;  %v839_v29 = vmul.f32 %v1978_v2, %v1365_v12  ;;  %v1367_v6 = vld [vmem:[%s1948_s27 + $0x2d0] sm:$0xfc]  ;;  %v1368_v7 = vld [vmem:[%s1948_s27 + $0x318] sm:$0x1] }
  0xf6   : >> { %v726_v28 = vrot.slane %v694_v16, 2  ;;  %v891_v31 = vadd.f32 %v869_v13, %v813_v21  ;;  %v668_v32 = vadd.f32 %v654_v22, %v618_v9  ;;  %v764_v33 = vmul.f32 %v1964_v56, %v1348_v18  ;;  %v1385_v12 = vld [vmem:[%s1948_s27 + $0x360] sm:$0xfe] }
  0xf7   : >> { %1045 = vst [vmem:[%s2045_s28 + $0x48] sm:$0x7f] %v1036_v20  ;;  %v840_v34 = vmul.f32 %v1978_v2, %v1366_v19  ;;  %v800_v38 = vrot.slane %v786_v23, 1  ;;  %v870_v39 = vrot.slane %v839_v29, 2  ;;  %v932_v41 = vmul.f32 %v1988_v11, %v1384_v24  ;;  %v1396_v13 = vld [vmem:[%s1948_s27 + $0x360] sm:$0xfc] }
  0xf8   : >> { %v727_v37 = vsel %vm715_vm0, %v725_v27, %v726_v28  ;;  %v916_v42 = vadd.f32 %v909_v1, %v891_v31  ;;  %v985_v45 = vmul.f32 %v1995_v17, %v1394_v25  ;;  %v1015_v48 = vsel %vm715_vm0, %v1013_v14, %v1014_v26  ;;  %v1378_v23 = vld [vmem:[%s1948_s27 + $0x360] sm:$0x7f]  ;;  %v1397_v24 = vld [vmem:[%s1948_s27 + $0x3a8] sm:$0x1]  ;;  %v612_v29 = vld [vmem:[%s1948_s27 + $0x2d0] sm:$0x7f] }
  0xf9   : >> { %v747_v43 = vadd.f32 %v727_v37, %v668_v32  ;;  %v871_v44 = vrot.slane %v840_v34, 2  ;;  %v986_v49 = vmul.f32 %v1995_v17, %v1395_v30  ;;  %v619_v51 = vmul.f32 %v1952_v50, %v611_v35  ;;  %v634_v30 = vld [vmem:[%s1948_s27 + $0x2d0] sm:$0xfe] }
  0xfa   : >> { %v641_v53 = vmul.f32 %v1956_v52, %v633_v36  ;;  %v959_v57 = vadd.f32 %v945_v3, %v916_v42  ;;  %v910_v59 = vmul.f32 %v1982_v5, %v1377_v40  ;;  %v946_v61 = vrot.slane %v932_v41, 1  ;;  %v682_v35 = vld [vmem:[%s1948_s27 + $0x2d0] sm:$0xfc]  ;;  %v683_v36 = vld [vmem:[%s1948_s27 + $0x318] sm:$0x1] }
  0xfb   : >> { %v771_v58 = vadd.f32 %v764_v33, %v747_v43  ;;  %v872_v63 = vsel %vm715_vm0, %v870_v39, %v871_v44  ;;  %v695_v1 = vmul.f32 %v1961_v55, %v680_v46  ;;  %v696_v4 = vmul.f32 %v1961_v55, %v681_v47  ;;  %v1357_v41 = vld [vmem:[%s1948_s27 + $0x360] sm:$0xfe] }
  0xfc   : >> { %v655_v0 = vrot.slane %v641_v53, 1  ;;  %v1037_v8 = vadd.f32 %v1015_v48, %v959_v57  ;;  %v1016_v9 = vrot.slane %v985_v45, 2  ;;  %v787_v10 = vmul.f32 %v1970_v60, %v1356_v54  ;;  %v1369_v46 = vld [vmem:[%s1948_s27 + $0x360] sm:$0xfc]  ;;  %v1370_v54 = vld [vmem:[%s1948_s27 + $0x3a8] sm:$0x1] }
  0xfd   : >> { %v814_v3 = vadd.f32 %v800_v38, %v771_v58  ;;  %v1017_v14 = vrot.slane %v986_v49, 2  ;;  %v728_v16 = vrot.slane %v695_v1, 2  ;;  %v729_v18 = vrot.slane %v696_v4, 2  ;;  %v1350_v53 = vld [vmem:[%s1948_s27 + $0x360] sm:$0x7f] }
  0xfe   : >> { %v669_v15 = vadd.f32 %v655_v0, %v619_v51  ;;  %1046 = vst [vmem:[%s2045_s28 + $0x90] sm:$0x7f] %v1037_v8  ;;  %v765_v20 = vmul.f32 %v1964_v56, %v1349_v62  ;;  %v841_v21 = vmul.f32 %v1978_v2, %v1367_v6  ;;  %v842_v22 = vmul.f32 %v1978_v2, %v1368_v7  ;;  %v1386_v62 = vld [vmem:[%s1948_s27 + $0x3f0] sm:$0xfe]  ;;  %v1399_v7 = vld [vmem:[%s1948_s27 + $0x438] sm:$0x1] }
  0xff   : >> { %v892_v19 = vadd.f32 %v872_v63, %v814_v3  ;;  %v730_v25 = vsel %vm715_vm0, %v728_v16, %v729_v18  ;;  %v801_v26 = vrot.slane %v787_v10, 1  ;;  %v933_v27 = vmul.f32 %v1988_v11, %v1385_v12  ;;  %v1398_v63 = vld [vmem:[%s1948_s27 + $0x3f0] sm:$0xfc]  ;;  %v613_v12 = vld [vmem:[%s1948_s27 + $0x360] sm:$0x7f] }
 0x100   : >> { %v987_v28 = vmul.f32 %v1995_v17, %v1396_v13  ;;  %v748_v32 = vadd.f32 %v730_v25, %v669_v15  ;;  %v873_v33 = vrot.slane %v841_v21, 2  ;;  %v874_v34 = vrot.slane %v842_v22, 2  ;;  %v635_v13 = vld [vmem:[%s1948_s27 + $0x360] sm:$0xfe]  ;;  %v1379_v18 = vld [vmem:[%s1948_s27 + $0x3f0] sm:$0x7f] }
 0x101   : >> { %v917_v31 = vadd.f32 %v910_v59, %v892_v19  ;;  %v1018_v37 = vsel %vm715_vm0, %v1016_v9, %v1017_v14  ;;  %v911_v38 = vmul.f32 %v1982_v5, %v1378_v23  ;;  %v947_v39 = vrot.slane %v933_v27, 1  ;;  %v685_v25 = vld [vmem:[%s1948_s27 + $0x3a8] sm:$0x1] }
 0x102   : >> { %v988_v40 = vmul.f32 %v1995_v17, %v1397_v24  ;;  %v772_v43 = vadd.f32 %v765_v20, %v748_v32  ;;  %v620_v44 = vmul.f32 %v1952_v50, %v612_v29  ;;  %v642_v45 = vmul.f32 %v1956_v52, %v634_v30  ;;  %v684_v24 = vld [vmem:[%s1948_s27 + $0x360] sm:$0xfc]  ;;  %v1358_v30 = vld [vmem:[%s1948_s27 + $0x3f0] sm:$0xfe] }
 0x103   : >> { %v960_v42 = vadd.f32 %v946_v61, %v917_v31  ;;  %v875_v47 = vsel %vm715_vm0, %v873_v33, %v874_v34  ;;  %v1019_v48 = vrot.slane %v987_v28, 2  ;;  %v697_v49 = vmul.f32 %v1961_v55, %v682_v35  ;;  %v1351_v35 = vld [vmem:[%s1948_s27 + $0x3f0] sm:$0x7f] }
 0x104   : >> { %v698_v51 = vmul.f32 %v1961_v55, %v683_v36  ;;  %v815_v58 = vadd.f32 %v801_v26, %v772_v43  ;;  %v656_v59 = vrot.slane %v642_v45, 1  ;;  %v788_v61 = vmul.f32 %v1970_v60, %v1357_v41  ;;  %v1371_v41 = vld [vmem:[%s1948_s27 + $0x3f0] sm:$0xfc] }
 0x105   : >> { %v1038_v57 = vadd.f32 %v1018_v37, %v960_v42  ;;  %v1020_v0 = vrot.slane %v988_v40, 2  ;;  %v731_v1 = vrot.slane %v697_v49, 2  ;;  %v843_v6 = vmul.f32 %v1978_v2, %v1369_v46 }
 0x106   : >> { %v732_v4 = vrot.slane %v698_v51, 2  ;;  %v893_v8 = vadd.f32 %v875_v47, %v815_v58  ;;  %v670_v3 = vadd.f32 %v656_v59, %v620_v44  ;;  %v766_v9 = vmul.f32 %v1964_v56, %v1350_v53  ;;  %v1400_v53 = vld [vmem:[%s1948_s27 + $0x480] sm:$0xfc] }
 0x107   : >> { %1047 = vst [vmem:[%s2045_s28 + $0xd8] sm:$0x7f] %v1038_v57  ;;  %v844_v10 = vmul.f32 %v1978_v2, %v1370_v54  ;;  %v802_v15 = vrot.slane %v788_v61, 1  ;;  %v876_v16 = vrot.slane %v843_v6, 2  ;;  %v934_v19 = vmul.f32 %v1988_v11, %v1386_v62  ;;  %v1401_v54 = vld [vmem:[%s1948_s27 + $0x4c8] sm:$0x1] }
 0x108   : >> { %v733_v14 = vsel %vm715_vm0, %v731_v1, %v732_v4  ;;  %v918_v20 = vadd.f32 %v911_v38, %v893_v8  ;;  %v989_v23 = vmul.f32 %v1995_v17, %v1398_v63  ;;  %v1021_v26 = vsel %vm715_vm0, %v1019_v48, %v1020_v0  ;;  %v1387_v59 = vld [vmem:[%s1948_s27 + $0x480] sm:$0xfe] }
 0x109   : >> { %v749_v21 = vadd.f32 %v733_v14, %v670_v3  ;;  %v877_v22 = vrot.slane %v844_v10, 2  ;;  %v990_v27 = vmul.f32 %v1995_v17, %v1399_v7  ;;  %v621_v28 = vmul.f32 %v1952_v50, %v613_v12  ;;  %v1372_v50 = vld [vmem:[%s1948_s27 + $0x438] sm:$0x1]  ;;  %v1380_v1 = vld [vmem:[%s1948_s27 + $0x480] sm:$0x7f] }
 0x10a   : >> { %v643_v29 = vmul.f32 %v1956_v52, %v635_v13  ;;  %v961_v31 = vadd.f32 %v947_v39, %v918_v20  ;;  %v912_v33 = vmul.f32 %v1982_v5, %v1379_v18  ;;  %v948_v34 = vrot.slane %v934_v19, 1 }
 0x10b   : >> { %v773_v32 = vadd.f32 %v766_v9, %v749_v21  ;;  %v878_v36 = vsel %vm715_vm0, %v876_v16, %v877_v22  ;;  %v699_v38 = vmul.f32 %v1961_v55, %v684_v24  ;;  %v700_v40 = vmul.f32 %v1961_v55, %v685_v25 }
 0x10c   : >> { %v657_v37 = vrot.slane %v643_v29, 1  ;;  %v1039_v52 = vadd.f32 %v1021_v26, %v961_v31  ;;  %v1022_v39 = vrot.slane %v989_v23, 2  ;;  %v789_v43 = vmul.f32 %v1970_v60, %v1358_v30 }
 0x10d   : >> { %v816_v42 = vadd.f32 %v802_v15, %v773_v32  ;;  %v1023_v44 = vrot.slane %v990_v27, 2  ;;  %v734_v46 = vrot.slane %v699_v38, 2  ;;  %v735_v47 = vrot.slane %v700_v40, 2 }
 0x10e   : >> { %v671_v45 = vadd.f32 %v657_v37, %v621_v28  ;;  %1048 = vst [vmem:[%s2045_s28 + $0x120] sm:$0x7f] %v1039_v52  ;;  %v767_v49 = vmul.f32 %v1964_v56, %v1351_v35  ;;  %v845_v55 = vmul.f32 %v1978_v2, %v1371_v41  ;;  %v846_v51 = vmul.f32 %v1978_v2, %v1372_v50 }
 0x10f   : >> { %v894_v48 = vadd.f32 %v878_v36, %v816_v42  ;;  %v736_v57 = vsel %vm715_vm0, %v734_v46, %v735_v47  ;;  %v803_v58 = vrot.slane %v789_v43, 1  ;;  %v1024_v0 = vsel %vm715_vm0, %v1022_v39, %v1023_v44 }
 0x110   : >> { %v750_v61 = vadd.f32 %v736_v57, %v671_v45  ;;  %v879_v62 = vrot.slane %v845_v55, 2  ;;  %v880_v63 = vrot.slane %v846_v51, 2  ;;  %v991_v56 = vmul.f32 %v1995_v17, %v1400_v53 }
 0x111   : >> { %v919_v60 = vadd.f32 %v912_v33, %v894_v48  ;;  %v992_v4 = vmul.f32 %v1995_v17, %v1401_v54  ;;  %v935_v7 = vmul.f32 %v1988_v11, %v1387_v59  ;;  %v913_v10 = vmul.f32 %v1982_v5, %v1380_v1 }
 0x112   : >> { %v774_v2 = vadd.f32 %v767_v49, %v750_v61  ;;  %v881_v8 = vsel %vm715_vm0, %v879_v62, %v880_v63  ;;  %v1025_v12 = vrot.slane %v991_v56, 2 }
 0x113   : >> { %v962_v6 = vadd.f32 %v948_v34, %v919_v60  ;;  %v1026_v13 = vrot.slane %v992_v4, 2  ;;  %v949_v15 = vrot.slane %v935_v7, 1 }
 0x114   : >> { %v817_v9 = vadd.f32 %v803_v58, %v774_v2 }
 0x115   : >> { %v1040_v3 = vadd.f32 %v1024_v0, %v962_v6  ;;  %v1027_v18 = vsel %vm715_vm0, %v1025_v12, %v1026_v13 }
 0x116   : >> { %v895_v14 = vadd.f32 %v881_v8, %v817_v9 }
 0x117   : >> { %1049 = vst [vmem:[%s2045_s28 + $0x168] sm:$0x7f] %v1040_v3 }
 0x118   : >> { %v920_v16 = vadd.f32 %v913_v10, %v895_v14 }
 0x11a   : >> { %v963_v17 = vadd.f32 %v949_v15, %v920_v16  ;;  %583 = sbr.rel (!%p581_p11) target bundleno = 213 (0xd5), region = 163 }
 0x11c   : >> { %v1041_v19 = vadd.f32 %v1027_v18, %v963_v17 }
 0x11e   : >> { %1050 = vst [vmem:[%s2045_s28 + $0x1b0] sm:$0x7f] %v1041_v19 }
 0x11f   : > { %1057 = sbr.rel (!%p1573_p6) target bundleno = 357 (0x165), region = 88 }
 0x120   : > { %s1408_s29 = smul.u32 (%p1573_p6), 72, %s1505_s11 }
 0x122   : > { %s2189_s4 = scalar_lea.vmem (%p1573_p6), %s2332_s2, %s1408_s29 }
 0x125   : > { %v1075_v5 = vld [vmem:[%s1930_s21] sm:$0xff]  ;;  %v1077_v11 = vld [vmem:[%s1930_s21 + $0x8] sm:$0xff]  ;;  %v1079_v20 = vld [vmem:[%s1930_s21 + $0x10] sm:$0xff] }
 0x126   : > { %1076 = vst [vmem:[%s2189_s4] sm:$0xff] %v1075_v5  ;;  %v1081_v21 = vld [vmem:[%s1930_s21 + $0x18] sm:$0xff]  ;;  %v1083_v22 = vld [vmem:[%s1930_s21 + $0x20] sm:$0xff]  ;;  %v1085_v23 = vld [vmem:[%s1930_s21 + $0x28] sm:$0xff] }
 0x127   : > { %1078 = vst [vmem:[%s2189_s4 + $0x8] sm:$0xff] %v1077_v11  ;;  %v1087_v24 = vld [vmem:[%s1930_s21 + $0x30] sm:$0xff]  ;;  %v1089_v25 = vld [vmem:[%s1930_s21 + $0x38] sm:$0xff]  ;;  %v1091_v26 = vld [vmem:[%s1930_s21 + $0x40] sm:$0xff] }
 0x128   : > { %1080 = vst [vmem:[%s2189_s4 + $0x10] sm:$0xff] %v1079_v20  ;;  %v1093_v27 = vld [vmem:[%s1930_s21 + $0x48] sm:$0xff]  ;;  %v1095_v28 = vld [vmem:[%s1930_s21 + $0x50] sm:$0xff]  ;;  %v1097_v29 = vld [vmem:[%s1930_s21 + $0x58] sm:$0xff] }
 0x129   : > { %1082 = vst [vmem:[%s2189_s4 + $0x18] sm:$0xff] %v1081_v21  ;;  %v1099_v30 = vld [vmem:[%s1930_s21 + $0x60] sm:$0xff]  ;;  %v1101_v31 = vld [vmem:[%s1930_s21 + $0x68] sm:$0xff]  ;;  %v1103_v32 = vld [vmem:[%s1930_s21 + $0x70] sm:$0xff] }
 0x12a   : > { %1084 = vst [vmem:[%s2189_s4 + $0x20] sm:$0xff] %v1083_v22  ;;  %v1105_v33 = vld [vmem:[%s1930_s21 + $0x78] sm:$0xff]  ;;  %v1107_v34 = vld [vmem:[%s1930_s21 + $0x80] sm:$0xff]  ;;  %v1109_v35 = vld [vmem:[%s1930_s21 + $0x88] sm:$0xff] }
 0x12b   : > { %1086 = vst [vmem:[%s2189_s4 + $0x28] sm:$0xff] %v1085_v23  ;;  %v1111_v36 = vld [vmem:[%s1930_s21 + $0x90] sm:$0xff]  ;;  %v1113_v37 = vld [vmem:[%s1930_s21 + $0x98] sm:$0xff]  ;;  %v1115_v38 = vld [vmem:[%s1930_s21 + $0xa0] sm:$0xff] }
 0x12c   : > { %1088 = vst [vmem:[%s2189_s4 + $0x30] sm:$0xff] %v1087_v24  ;;  %v1117_v40 = vld [vmem:[%s1930_s21 + $0xa8] sm:$0xff]  ;;  %v1119_v41 = vld [vmem:[%s1930_s21 + $0xb0] sm:$0xff]  ;;  %v1121_v50 = vld [vmem:[%s1930_s21 + $0xb8] sm:$0xff] }
 0x12d   : > { %1090 = vst [vmem:[%s2189_s4 + $0x38] sm:$0xff] %v1089_v25  ;;  %v1123_v52 = vld [vmem:[%s1930_s21 + $0xc0] sm:$0xff]  ;;  %v1125_v42 = vld [vmem:[%s1930_s21 + $0xc8] sm:$0xff]  ;;  %v1127_v39 = vld [vmem:[%s1930_s21 + $0xd0] sm:$0xff] }
 0x12e   : > { %1092 = vst [vmem:[%s2189_s4 + $0x40] sm:$0xff] %v1091_v26  ;;  %v1129_v43 = vld [vmem:[%s1930_s21 + $0xd8] sm:$0xff]  ;;  %v1131_v44 = vld [vmem:[%s1930_s21 + $0xe0] sm:$0xff]  ;;  %v1133_v45 = vld [vmem:[%s1930_s21 + $0xe8] sm:$0xff] }
 0x12f   : > { %1094 = vst [vmem:[%s2189_s4 + $0x90] sm:$0xff] %v1093_v27  ;;  %v1135_v46 = vld [vmem:[%s1930_s21 + $0xf0] sm:$0xff]  ;;  %v1137_v47 = vld [vmem:[%s1930_s21 + $0xf8] sm:$0xff]  ;;  %v1139_v48 = vld [vmem:[%s1930_s21 + $0x100] sm:$0xff] }
 0x130   : > { %1096 = vst [vmem:[%s2189_s4 + $0x98] sm:$0xff] %v1095_v28  ;;  %v1141_v49 = vld [vmem:[%s1930_s21 + $0x108] sm:$0xff]  ;;  %v1143_v55 = vld [vmem:[%s1930_s21 + $0x110] sm:$0xff]  ;;  %v1145_v51 = vld [vmem:[%s1930_s21 + $0x118] sm:$0xff] }
 0x131   : > { %1098 = vst [vmem:[%s2189_s4 + $0xa0] sm:$0xff] %v1097_v29  ;;  %v1147_v53 = vld [vmem:[%s1930_s21 + $0x120] sm:$0xff]  ;;  %v1149_v54 = vld [vmem:[%s1930_s21 + $0x128] sm:$0xff]  ;;  %v1151_v57 = vld [vmem:[%s1930_s21 + $0x130] sm:$0xff] }
 0x132   : > { %1100 = vst [vmem:[%s2189_s4 + $0xa8] sm:$0xff] %v1099_v30  ;;  %v1153_v58 = vld [vmem:[%s1930_s21 + $0x138] sm:$0xff]  ;;  %v1155_v59 = vld [vmem:[%s1930_s21 + $0x140] sm:$0xff]  ;;  %v1157_v60 = vld [vmem:[%s1930_s21 + $0x148] sm:$0xff] }
 0x133   : > { %1102 = vst [vmem:[%s2189_s4 + $0xb0] sm:$0xff] %v1101_v31  ;;  %v1159_v61 = vld [vmem:[%s1930_s21 + $0x150] sm:$0xff]  ;;  %v1161_v62 = vld [vmem:[%s1930_s21 + $0x158] sm:$0xff]  ;;  %v1163_v63 = vld [vmem:[%s1930_s21 + $0x160] sm:$0xff] }
 0x134   : > { %1104 = vst [vmem:[%s2189_s4 + $0xb8] sm:$0xff] %v1103_v32  ;;  %v1165_v0 = vld [vmem:[%s1930_s21 + $0x168] sm:$0xff]  ;;  %v1167_v1 = vld [vmem:[%s1930_s21 + $0x170] sm:$0xff]  ;;  %v1169_v56 = vld [vmem:[%s1930_s21 + $0x178] sm:$0xff] }
 0x135   : > { %1106 = vst [vmem:[%s2189_s4 + $0xc0] sm:$0xff] %v1105_v33  ;;  %v1171_v4 = vld [vmem:[%s1930_s21 + $0x180] sm:$0xff]  ;;  %v1173_v6 = vld [vmem:[%s1930_s21 + $0x188] sm:$0xff]  ;;  %v1175_v2 = vld [vmem:[%s1930_s21 + $0x190] sm:$0xff] }
 0x136   : > { %1108 = vst [vmem:[%s2189_s4 + $0xc8] sm:$0xff] %v1107_v34  ;;  %v1177_v7 = vld [vmem:[%s1930_s21 + $0x198] sm:$0xff]  ;;  %v1179_v8 = vld [vmem:[%s1930_s21 + $0x1a0] sm:$0xff]  ;;  %v1181_v3 = vld [vmem:[%s1930_s21 + $0x1a8] sm:$0xff] }
 0x137   : > { %1110 = vst [vmem:[%s2189_s4 + $0xd0] sm:$0xff] %v1109_v35  ;;  %v1183_v9 = vld [vmem:[%s1930_s21 + $0x1b0] sm:$0xff]  ;;  %v1185_v10 = vld [vmem:[%s1930_s21 + $0x1b8] sm:$0xff]  ;;  %v1187_v12 = vld [vmem:[%s1930_s21 + $0x1c0] sm:$0xff] }
 0x138   : > { %1112 = vst [vmem:[%s2189_s4 + $0x120] sm:$0xff] %v1111_v36  ;;  %v1189_v13 = vld [vmem:[%s1930_s21 + $0x1c8] sm:$0xff]  ;;  %v1191_v14 = vld [vmem:[%s1930_s21 + $0x1d0] sm:$0xff]  ;;  %v1193_v15 = vld [vmem:[%s1930_s21 + $0x1d8] sm:$0xff] }
 0x139   : > { %1114 = vst [vmem:[%s2189_s4 + $0x128] sm:$0xff] %v1113_v37  ;;  %v1195_v16 = vld [vmem:[%s1930_s21 + $0x1e0] sm:$0xff]  ;;  %v1197_v18 = vld [vmem:[%s1930_s21 + $0x1e8] sm:$0xff]  ;;  %v1199_v17 = vld [vmem:[%s1930_s21 + $0x1f0] sm:$0xff] }
 0x13a   : > { %1116 = vst [vmem:[%s2189_s4 + $0x130] sm:$0xff] %v1115_v38 }
 0x13b   : > { %1118 = vst [vmem:[%s2189_s4 + $0x138] sm:$0xff] %v1117_v40 }
 0x13c   : > { %1120 = vst [vmem:[%s2189_s4 + $0x140] sm:$0xff] %v1119_v41 }
 0x13d   : > { %1122 = vst [vmem:[%s2189_s4 + $0x148] sm:$0xff] %v1121_v50 }
 0x13e   : > { %1124 = vst [vmem:[%s2189_s4 + $0x150] sm:$0xff] %v1123_v52 }
 0x13f   : > { %1126 = vst [vmem:[%s2189_s4 + $0x158] sm:$0xff] %v1125_v42 }
 0x140   : > { %1128 = vst [vmem:[%s2189_s4 + $0x160] sm:$0xff] %v1127_v39 }
 0x141   : > { %1130 = vst [vmem:[%s2189_s4 + $0x1b0] sm:$0xff] %v1129_v43 }
 0x142   : > { %1132 = vst [vmem:[%s2189_s4 + $0x1b8] sm:$0xff] %v1131_v44 }
 0x143   : > { %1134 = vst [vmem:[%s2189_s4 + $0x1c0] sm:$0xff] %v1133_v45 }
 0x144   : > { %1136 = vst [vmem:[%s2189_s4 + $0x1c8] sm:$0xff] %v1135_v46 }
 0x145   : > { %1138 = vst [vmem:[%s2189_s4 + $0x1d0] sm:$0xff] %v1137_v47 }
 0x146   : > { %1140 = vst [vmem:[%s2189_s4 + $0x1d8] sm:$0xff] %v1139_v48 }
 0x147   : > { %1142 = vst [vmem:[%s2189_s4 + $0x1e0] sm:$0xff] %v1141_v49 }
 0x148   : > { %1144 = vst [vmem:[%s2189_s4 + $0x1e8] sm:$0xff] %v1143_v55 }
 0x149   : > { %1146 = vst [vmem:[%s2189_s4 + $0x1f0] sm:$0xff] %v1145_v51 }
 0x14a   : > { %1148 = vst [vmem:[%s2189_s4 + $0x240] sm:$0xff] %v1147_v53 }
 0x14b   : > { %1150 = vst [vmem:[%s2189_s4 + $0x248] sm:$0xff] %v1149_v54 }
 0x14c   : > { %1152 = vst [vmem:[%s2189_s4 + $0x250] sm:$0xff] %v1151_v57 }
 0x14d   : > { %1154 = vst [vmem:[%s2189_s4 + $0x258] sm:$0xff] %v1153_v58 }
 0x14e   : > { %1156 = vst [vmem:[%s2189_s4 + $0x260] sm:$0xff] %v1155_v59 }
 0x14f   : > { %1158 = vst [vmem:[%s2189_s4 + $0x268] sm:$0xff] %v1157_v60 }
 0x150   : > { %1160 = vst [vmem:[%s2189_s4 + $0x270] sm:$0xff] %v1159_v61 }
 0x151   : > { %1162 = vst [vmem:[%s2189_s4 + $0x278] sm:$0xff] %v1161_v62 }
 0x152   : > { %1164 = vst [vmem:[%s2189_s4 + $0x280] sm:$0xff] %v1163_v63 }
 0x153   : > { %1166 = vst [vmem:[%s2189_s4 + $0x2d0] sm:$0xff] %v1165_v0 }
 0x154   : > { %1168 = vst [vmem:[%s2189_s4 + $0x2d8] sm:$0xff] %v1167_v1 }
 0x155   : > { %1170 = vst [vmem:[%s2189_s4 + $0x2e0] sm:$0xff] %v1169_v56 }
 0x156   : > { %1172 = vst [vmem:[%s2189_s4 + $0x2e8] sm:$0xff] %v1171_v4 }
 0x157   : > { %1174 = vst [vmem:[%s2189_s4 + $0x2f0] sm:$0xff] %v1173_v6 }
 0x158   : > { %1176 = vst [vmem:[%s2189_s4 + $0x2f8] sm:$0xff] %v1175_v2 }
 0x159   : > { %1178 = vst [vmem:[%s2189_s4 + $0x300] sm:$0xff] %v1177_v7 }
 0x15a   : > { %1180 = vst [vmem:[%s2189_s4 + $0x308] sm:$0xff] %v1179_v8 }
 0x15b   : > { %1182 = vst [vmem:[%s2189_s4 + $0x310] sm:$0xff] %v1181_v3 }
 0x15c   : > { %1184 = vst [vmem:[%s2189_s4 + $0x360] sm:$0xff] %v1183_v9 }
 0x15d   : > { %1186 = vst [vmem:[%s2189_s4 + $0x368] sm:$0xff] %v1185_v10 }
 0x15e   : > { %1188 = vst [vmem:[%s2189_s4 + $0x370] sm:$0xff] %v1187_v12 }
 0x15f   : > { %1190 = vst [vmem:[%s2189_s4 + $0x378] sm:$0xff] %v1189_v13 }
 0x160   : > { %1192 = vst [vmem:[%s2189_s4 + $0x380] sm:$0xff] %v1191_v14 }
 0x161   : > { %1194 = vst [vmem:[%s2189_s4 + $0x388] sm:$0xff] %v1193_v15 }
 0x162   : > { %1196 = vst [vmem:[%s2189_s4 + $0x390] sm:$0xff] %v1195_v16 }
 0x163   : > { %1198 = vst [vmem:[%s2189_s4 + $0x398] sm:$0xff] %v1197_v18 }
 0x164   : > { %1200 = vst [vmem:[%s2189_s4 + $0x3a0] sm:$0xff] %v1199_v17 }
 0x165 PF: > { %s12_s13 = sadd.s32 1, %s1513_s13   ;;  %s2335_s9 = smov %s1501_s10 }
 0x166   : > { %p9_p12 = scmp.ge.s32.totalorder %s12_s13, 4   ;;  %s2336_s10 = smov %s1578_s20 }
 0x167   : > { %s2337_s11 = smov %s1509_s12  ;;  %s2338_s12 = smov %s2340_s14 }
 0x168   :  { %11 = sbr.rel (!%p9_p12) target bundleno = 3 (0x3), region = 174 }

</bundles_post_ra>
